<compile_context>
chip_gen: v5e
topology: v5e:2x2
jax: 0.10.0
libtpu: 0.0.40
codegen_flags: <defaults>
</compile_context>

<pallas_src>
import math
import numpy as np
import jax
import jax.numpy as jnp
from jax.experimental import pallas as pl
from jax.experimental.pallas import tpu as pltpu


# ----------------------------------------------------------------------------
# Host-side construction of the (small) linear operators.
# ----------------------------------------------------------------------------
def _make_pool_matrix(in_size: int, out_size: int) -> np.ndarray:
    """P (out,in): P @ v == nn.AdaptiveAvgPool1d(out_size)(v)."""
    P = np.zeros((out_size, in_size), dtype=np.float32)
    for i in range(out_size):
        start = (i * in_size) // out_size
        end = -(-((i + 1) * in_size) // out_size)  # ceil
        P[i, start:end] = 1.0 / float(end - start)
    return P


def _make_bilinear_matrix(out_size: int, in_size: int) -> np.ndarray:
    """U (out,in): U @ v == F.interpolate(mode='bilinear', align_corners=True) per axis."""
    U = np.zeros((out_size, in_size), dtype=np.float32)
    if in_size == 1:
        U[:, 0] = 1.0
        return U
    scale = (in_size - 1) / (out_size - 1) if out_size > 1 else 0.0
    for o in range(out_size):
        src = o * scale
        i0 = min(int(np.floor(src)), in_size - 1)
        i1 = min(i0 + 1, in_size - 1)
        frac = src - i0
        U[o, i0] += 1.0 - frac
        U[o, i1] += frac
    return U


def _choose_chunk(C: int, BR: int, c_chunk=None, target: int = 256) -> int:
    """Channel chunk CH with CH | C and CH | (num_bins*R); prefer multiples of 8, <= target."""
    if c_chunk is not None:
        if C % c_chunk or BR % c_chunk:
            raise ValueError(f"c_chunk={c_chunk} must divide C={C} and num_bins*R={BR}")
        return int(c_chunk)
    g = math.gcd(C, BR)
    divs = [d for d in range(1, min(g, target) + 1) if g % d == 0]
    aligned = [d for d in divs if d % 8 == 0]
    return max(aligned) if aligned else max(divs)


# ----------------------------------------------------------------------------
# Fused Pallas kernel.
#   grid = (N, J), J = j_in + j_br.
#   refs: x, Pf_all, Wc(chunked), bias(chunked), mask(chunked), Uf_all, out, z_acc scratch
# ----------------------------------------------------------------------------
def _make_ppm_kernel(j_in: int, j_br: int):
    def kernel(x_ref, pf_ref, wc_ref, bias_ref, mask_ref, uf_ref, out_ref, z_ref):
        j = pl.program_id(1)

        @pl.when(j == 0)
        def _init():
            z_ref[...] = jnp.zeros_like(z_ref)

        # ---- phase 1: stream x chunk, write pass-through rows, accumulate z ----
        @pl.when(j < j_in)
        def _accumulate_and_passthrough():
            xc = x_ref[0, 0]                                   # (CH, HW), original dtype
            out_ref[0, 0] = xc.astype(out_ref.dtype)           # bit-exact pass-through
            xm = xc.astype(pf_ref.dtype)                       # in-kernel cast (no host pass)
            pooled = jnp.dot(xm, pf_ref[...],
                             preferred_element_type=jnp.float32)        # (CH, BB)
            pooled = pooled.astype(wc_ref.dtype)
            for jb in range(j_br):                             # static, small unrolled loop
                z_ref[jb] += jnp.dot(wc_ref[0, jb], pooled,
                                     preferred_element_type=jnp.float32)  # (CH, BB)

        # ---- phase 2: bias + ReLU + mask + bilinear upsample for CH output rows ----
        @pl.when(j >= j_in)
        def _upsample_and_store():
            jb = j - j_in
            z = z_ref[jb]                                      # (CH, BB) f32, dynamic lead idx
            t = jnp.maximum(z + bias_ref[0], 0.0) * mask_ref[0]
            up = jnp.dot(t.astype(uf_ref.dtype), uf_ref[...],
                         preferred_element_type=jnp.float32)   # (CH, HW)
            out_ref[0, 0] = up.astype(out_ref.dtype)

    return kernel


# ----------------------------------------------------------------------------
# Wrapper.
# ----------------------------------------------------------------------------
def ppm_forward(x, params, bins, eps=1e-5, compute_dtype=jnp.bfloat16, c_chunk=None):
    """PPM forward (eval-mode BN). x: (N,C,H,W) -> (N, C + len(bins)*R, H, W)."""
    N, C, H, W = x.shape
    HW = H * W
    R = int(params[0]["w_conv"].shape[0])
    num_bins = len(bins)
    BR = num_bins * R
    BB = int(sum(b * b for b in bins))
    C_out = C + BR

    ch = _choose_chunk(C, BR, c_chunk)
    j_in, j_br = C // ch, BR // ch
    J = j_in + j_br

    # ---- host-side constants (tiny) ----
    pf_cols, uf_rows, wc_rows, bias_rows = [], [], [], []
    mask_full = np.zeros((BR, BB), np.float32)
    off = 0
    for kb, (b, p) in enumerate(zip(bins, params)):
        Ph, Pw = _make_pool_matrix(H, b), _make_pool_matrix(W, b)
        Uh, Uw = _make_bilinear_matrix(H, b), _make_bilinear_matrix(W, b)
        pf_cols.append(np.kron(Ph, Pw).T)                       # (HW, b*b)
        uf_rows.append(np.kron(Uh, Uw).T)                       # (b*b, HW)
        gamma = np.asarray(p["gamma"], np.float32)
        beta = np.asarray(p["beta"], np.float32)
        mean = np.asarray(p["mean"], np.float32)
        var = np.asarray(p["var"], np.float32)
        scale = gamma / np.sqrt(var + eps)
        wc_rows.append(np.asarray(p["w_conv"], np.float32) * scale[:, None])  # (R, C), BN folded
        bias_rows.append((beta - mean * scale).astype(np.float32))            # (R,)
        mask_full[kb * R:(kb + 1) * R, off:off + b * b] = 1.0
        off += b * b

    pf_all = np.concatenate(pf_cols, axis=1).astype(np.float32)   # (HW, BB)
    uf_all = np.concatenate(uf_rows, axis=0).astype(np.float32)   # (BB, HW)
    wc_all = np.concatenate(wc_rows, axis=0).astype(np.float32)   # (BR, C)
    bias_full = np.repeat(np.concatenate(bias_rows)[:, None], BB, axis=1).astype(np.float32)

    # pre-chunked layouts -> every BlockSpec block equals full trailing dims
    wc4 = wc_all.reshape(j_br, ch, j_in, ch).transpose(2, 0, 1, 3)  # (j_in, j_br, CH, CH)
    bias3 = bias_full.reshape(j_br, ch, BB)
    mask3 = mask_full.reshape(j_br, ch, BB)
    x4 = x.reshape(N, j_in, ch, HW)          # NO host-side dtype cast; cast in-kernel

    pf_d = jnp.asarray(pf_all, dtype=compute_dtype)
    uf_d = jnp.asarray(uf_all, dtype=compute_dtype)
    wc_d = jnp.asarray(wc4, dtype=compute_dtype)
    bias_d = jnp.asarray(bias3, dtype=jnp.float32)   # bias / mask / accum stay f32
    mask_d = jnp.asarray(mask3, dtype=jnp.float32)

    # ---- VMEM budget + cost estimate ----
    xb = x.dtype.itemsize
    cb = jnp.dtype(compute_dtype).itemsize
    vmem_est = (2 * ch * HW * xb                 # x chunk, double-buffered
                + 2 * ch * HW * xb               # out chunk, double-buffered
                + 2 * j_br * ch * ch * cb        # Wc chunk
                + 2 * (HW * BB + BB * HW) * cb   # Pf + Uf (worst case, 2x)
                + 2 * 2 * ch * BB * 4            # bias + mask chunks
                + j_br * ch * BB * 4)            # z accumulator scratch
    vmem_limit = int(min(64 * 2 ** 20, max(2 * vmem_est + (4 << 20), 16 * 2 ** 20)))

    flops = 2 * N * BB * (C * HW + BR * C + BR * HW)
    bytes_accessed = (x.size * xb + N * C_out * HW * xb
                      + (pf_all.size + uf_all.size + wc_all.size) * cb
                      + (bias_full.size + mask_full.size) * 4)

    kernel = _make_ppm_kernel(j_in, j_br)

    def build_and_run(single_buffer_consts: bool):
        def const_spec(shape):
            if single_buffer_consts:
                return pl.BlockSpec(shape, lambda n, j: (0, 0),
                                    pipeline_mode=pl.Buffered(buffer_count=1))
            return pl.BlockSpec(shape, lambda n, j: (0, 0))

        in_specs = [
            # x: chunked along C; index frozen at the last chunk during phase 2 (no refetch)
            pl.BlockSpec((1, 1, ch, HW),
                         lambda n, j: (n, jnp.minimum(j, j_in - 1), 0, 0)),
            const_spec((HW, BB)),                                      # Pf_all, single-buffered
            pl.BlockSpec((1, j_br, ch, ch),
                         lambda n, j: (jnp.minimum(j, j_in - 1), 0, 0, 0)),   # Wc chunk
            pl.BlockSpec((1, ch, BB),
                         lambda n, j: (jnp.maximum(j - j_in, 0), 0, 0)),      # bias chunk
            pl.BlockSpec((1, ch, BB),
                         lambda n, j: (jnp.maximum(j - j_in, 0), 0, 0)),      # mask chunk
            const_spec((BB, HW)),                                      # Uf_all, single-buffered
        ]
        return pl.pallas_call(
            kernel,
            out_shape=jax.ShapeDtypeStruct((N, J, ch, HW), x.dtype),
            grid=(N, J),
            in_specs=in_specs,
            out_specs=pl.BlockSpec((1, 1, ch, HW), lambda n, j: (n, j, 0, 0)),
            scratch_shapes=[pltpu.VMEM((j_br, ch, BB), jnp.float32)],
            compiler_params=pltpu.CompilerParams(
                dimension_semantics=("parallel", "arbitrary"),
                vmem_limit_bytes=vmem_limit),
            cost_estimate=pl.CostEstimate(flops=int(flops), transcendentals=0,
                                          bytes_accessed=int(bytes_accessed)),
        )(x4, pf_d, wc_d, bias_d, mask_d, uf_d)

    try:
        out4 = build_and_run(True)
    except Exception:  # fall back if Buffered(1) single-buffering is unsupported
        out4 = build_and_run(False)

    return out4.reshape(N, C_out, H, W)


# ----------------------------------------------------------------------------
# Parameters (deterministic, mirrors shapes created in PPM.__init__)
# ----------------------------------------------------------------------------
def init_ppm_params(key, in_dim, reduction_dim, bins):
    params = []
    for _ in bins:
        k1, k2, k3, k4, k5, key = jax.random.split(key, 6)
        params.append({
            "w_conv": (jax.random.normal(k1, (reduction_dim, in_dim)) * 0.2
                       ).astype(jnp.float32),                             # Conv2d 1x1, no bias
            "gamma": jax.random.uniform(k2, (reduction_dim,), minval=0.8,
                                        maxval=1.2).astype(jnp.float32),  # BN weight
            "beta": (jax.random.normal(k3, (reduction_dim,)) * 0.1
                     ).astype(jnp.float32),                               # BN bias
            "mean": (jax.random.normal(k4, (reduction_dim,)) * 0.1
                     ).astype(jnp.float32),                               # BN running_mean
            "var": jax.random.uniform(k5, (reduction_dim,), minval=0.5,
                                      maxval=1.5).astype(jnp.float32),    # BN running_var
        })
    return params


# ----------------------------------------------------------------------------
# Pure-JAX reference for verification.
# ----------------------------------------------------------------------------
def ppm_reference(x, params, bins, eps=1e-5):
    N, C, H, W = x.shape
    outs = [x]
    for b, p in zip(bins, params):
        Ph = jnp.asarray(_make_pool_matrix(H, b))
        Pw = jnp.asarray(_make_pool_matrix(W, b))
        Uh = jnp.asarray(_make_bilinear_matrix(H, b))
        Uw = jnp.asarray(_make_bilinear_matrix(W, b))
        pooled = jnp.einsum('ih,nchw,jw->ncij', Ph, x, Pw)
        z = jnp.einsum('rc,ncij->nrij', p["w_conv"], pooled)
        scale = p["gamma"] / jnp.sqrt(p["var"] + eps)
        bias = p["beta"] - p["mean"] * scale
        z = jnp.maximum(z * scale[None, :, None, None] + bias[None, :, None, None], 0.0)
        up = jnp.einsum('hi,nrij,wj->nrhw', Uh, z, Uw)
        outs.append(up)
    return jnp.concatenate(outs, axis=1)


if __name__ == "__main__":
    bins = (1, 2, 3, 6)

    # --- config 1: toy shapes matching the module (single input chunk) ---
    N, C, H, W = 2, 4, 16, 16
    reduction_dim = 4
    key = jax.random.PRNGKey(0)
    kx, kp, kx2, kp2 = jax.random.split(key, 4)
    x = jax.random.normal(kx, (N, C, H, W), dtype=jnp.float32)
    params = init_ppm_params(kp, C, reduction_dim, bins)
    ref = jax.block_until_ready(ppm_reference(x, params, bins))

    # f32 compute path: matches the reference tightly.
    out_f32 = jax.block_until_ready(
        ppm_forward(x, params, bins, compute_dtype=jnp.float32))
    assert out_f32.shape == (N, C + len(bins) * reduction_dim, H, W), out_f32.shape
    np.testing.assert_allclose(np.asarray(out_f32), np.asarray(ref), rtol=2e-3, atol=2e-3)

    # bf16 operand path (default): f32 accumulation/output; pass-through stays bit-exact.
    out_bf16 = jax.block_until_ready(ppm_forward(x, params, bins))
    np.testing.assert_allclose(np.asarray(out_bf16), np.asarray(ref), rtol=5e-2, atol=5e-2)
    np.testing.assert_array_equal(np.asarray(out_bf16)[:, :C], np.asarray(x))

    # --- config 2: exercise the multi-chunk path (grid=(N, J), z accumulation across chunks) ---
    C2, R2 = 16, 8
    x2 = jax.random.normal(kx2, (N, C2, H, W), dtype=jnp.float32)
    params2 = init_ppm_params(kp2, C2, R2, bins)
    ref2 = jax.block_until_ready(ppm_reference(x2, params2, bins))
    out2 = jax.block_until_ready(
        ppm_forward(x2, params2, bins, compute_dtype=jnp.float32, c_chunk=8))
    assert out2.shape == (N, C2 + len(bins) * R2, H, W), out2.shape
    np.testing.assert_allclose(np.asarray(out2), np.asarray(ref2), rtol=2e-3, atol=2e-3)

    print("KERNEL_OK")
</pallas_src>

<mosaic_0001>
module attributes {stable_mosaic.version = 11 : i64} {
  func.func @kernel(%arg0: i32, %arg1: i32, %arg2: memref<1x1x4x256xf32, #tpu.memory_space<vmem>>, %arg3: memref<256x50xf32, #tpu.memory_space<vmem>>, %arg4: memref<1x4x4x4xf32, #tpu.memory_space<vmem>>, %arg5: memref<1x4x50xf32, #tpu.memory_space<vmem>>, %arg6: memref<1x4x50xf32, #tpu.memory_space<vmem>>, %arg7: memref<50x256xf32, #tpu.memory_space<vmem>>, %arg8: memref<1x1x4x256xf32, #tpu.memory_space<vmem>>, %arg9: memref<4x4x50xf32, #tpu.memory_space<vmem>>) attributes {dimension_semantics = [#tpu.dimension_semantics<parallel>, #tpu.dimension_semantics<arbitrary>], iteration_bounds = array<i64: 2, 5>, scalar_prefetch = 0 : i64, scratch_operands = 1 : i64, tpu.core_type = #tpu.core_type<tc>, window_params = [{transform_indices = @transform_0, window_bounds = array<i64: 1, 1, 4, 256>}, {pipeline_mode = #tpu.pipeline_mode<synchronous>, transform_indices = @transform_1, window_bounds = array<i64: 256, 50>}, {transform_indices = @transform_2, window_bounds = array<i64: 1, 4, 4, 4>}, {transform_indices = @transform_3, window_bounds = array<i64: 1, 4, 50>}, {transform_indices = @transform_4, window_bounds = array<i64: 1, 4, 50>}, {pipeline_mode = #tpu.pipeline_mode<synchronous>, transform_indices = @transform_5, window_bounds = array<i64: 50, 256>}, {transform_indices = @transform_6, window_bounds = array<i64: 1, 1, 4, 256>}]} {
    %c0_i32 = arith.constant 0 : i32
    %0 = arith.cmpi eq, %arg1, %c0_i32 : i32
    %1 = arith.extui %0 : i1 to i32
    %c0_i32_0 = arith.constant 0 : i32
    %2 = arith.cmpi ne, %1, %c0_i32_0 : i32
    scf.if %2 {
      %cst = arith.constant 0.000000e+00 : f32
      %9 = vector.broadcast %cst : f32 to vector<4x4x50xf32>
      %c0 = arith.constant 0 : index
      %c0_4 = arith.constant 0 : index
      %c0_5 = arith.constant 0 : index
      %10 = vector.load %arg9[%c0, %c0_4, %c0_5] : memref<4x4x50xf32, #tpu.memory_space<vmem>>, vector<4x4x50xf32>
      tpu.vector_store %arg9[%c0, %c0_4, %c0_5], %9 {strides = array<i32>} : memref<4x4x50xf32, #tpu.memory_space<vmem>>, vector<4x4x50xf32>,
    } else {
    }
    %c1_i32 = arith.constant 1 : i32
    %3 = arith.cmpi slt, %arg1, %c1_i32 : i32
    %4 = arith.extui %3 : i1 to i32
    %c0_i32_1 = arith.constant 0 : i32
    %5 = arith.cmpi ne, %4, %c0_i32_1 : i32
    scf.if %5 {
      %c0 = arith.constant 0 : index
      %c0_4 = arith.constant 0 : index
      %c0_5 = arith.constant 0 : index
      %c0_6 = arith.constant 0 : index
      %9 = vector.load %arg2[%c0, %c0_4, %c0_5, %c0_6] : memref<1x1x4x256xf32, #tpu.memory_space<vmem>>, vector<1x1x4x256xf32>
      %10 = vector.shape_cast %9 : vector<1x1x4x256xf32> to vector<4x256xf32>
      %c0_7 = arith.constant 0 : index
      %c0_8 = arith.constant 0 : index
      %c0_9 = arith.constant 0 : index
      %c0_10 = arith.constant 0 : index
      %11 = vector.load %arg8[%c0_7, %c0_8, %c0_9, %c0_10] : memref<1x1x4x256xf32, #tpu.memory_space<vmem>>, vector<1x1x4x256xf32>
      %12 = vector.shape_cast %11 : vector<1x1x4x256xf32> to vector<4x256xf32>
      %13 = vector.shape_cast %10 : vector<4x256xf32> to vector<1x1x4x256xf32>
      tpu.vector_store %arg8[%c0_7, %c0_8, %c0_9, %c0_10], %13 {strides = array<i32>} : memref<1x1x4x256xf32, #tpu.memory_space<vmem>>, vector<1x1x4x256xf32>,
      %c0_11 = arith.constant 0 : index
      %c0_12 = arith.constant 0 : index
      %14 = vector.load %arg3[%c0_11, %c0_12] : memref<256x50xf32, #tpu.memory_space<vmem>>, vector<256x50xf32>
      %cst = arith.constant dense<0.000000e+00> : vector<4x50xf32>
      %15 = tpu.matmul %10, %14, %cst {dimension_numbers = #tpu.dot_dimension_numbers<[1], [0], [0], [1], [0, 0, 1, 1], [], []>} : vector<4x256xf32>, vector<256x50xf32>, vector<4x50xf32> -> vector<4x50xf32>
      %c0_13 = arith.constant 0 : index
      %c0_14 = arith.constant 0 : index
      %c0_15 = arith.constant 0 : index
      %16 = vector.load %arg9[%c0_13, %c0_14, %c0_15] : memref<4x4x50xf32, #tpu.memory_space<vmem>>, vector<1x4x50xf32>
      %17 = vector.shape_cast %16 : vector<1x4x50xf32> to vector<4x50xf32>
      %c0_16 = arith.constant 0 : index
      %c0_17 = arith.constant 0 : index
      %c0_18 = arith.constant 0 : index
      %c0_19 = arith.constant 0 : index
      %18 = vector.load %arg4[%c0_16, %c0_17, %c0_18, %c0_19] : memref<1x4x4x4xf32, #tpu.memory_space<vmem>>, vector<1x1x4x4xf32>
      %19 = vector.shape_cast %18 : vector<1x1x4x4xf32> to vector<4x4xf32>
      %cst_20 = arith.constant dense<0.000000e+00> : vector<4x50xf32>
      %20 = tpu.matmul %19, %15, %cst_20 {dimension_numbers = #tpu.dot_dimension_numbers<[1], [0], [0], [1], [0, 0, 1, 1], [], []>} : vector<4x4xf32>, vector<4x50xf32>, vector<4x50xf32> -> vector<4x50xf32>
      %21 = arith.addf %17, %20 : vector<4x50xf32>
      %c0_21 = arith.constant 0 : index
      %c0_22 = arith.constant 0 : index
      %c0_23 = arith.constant 0 : index
      %22 = vector.load %arg9[%c0_21, %c0_22, %c0_23] : memref<4x4x50xf32, #tpu.memory_space<vmem>>, vector<1x4x50xf32>
      %23 = vector.shape_cast %22 : vector<1x4x50xf32> to vector<4x50xf32>
      %24 = vector.shape_cast %21 : vector<4x50xf32> to vector<1x4x50xf32>
      tpu.vector_store %arg9[%c0_21, %c0_22, %c0_23], %24 {strides = array<i32>} : memref<4x4x50xf32, #tpu.memory_space<vmem>>, vector<1x4x50xf32>,
      %c1 = arith.constant 1 : index
      %c0_24 = arith.constant 0 : index
      %c0_25 = arith.constant 0 : index
      %25 = vector.load %arg9[%c1, %c0_24, %c0_25] : memref<4x4x50xf32, #tpu.memory_space<vmem>>, vector<1x4x50xf32>
      %26 = vector.shape_cast %25 : vector<1x4x50xf32> to vector<4x50xf32>
      %c0_26 = arith.constant 0 : index
      %c1_27 = arith.constant 1 : index
      %c0_28 = arith.constant 0 : index
      %c0_29 = arith.constant 0 : index
      %27 = vector.load %arg4[%c0_26, %c1_27, %c0_28, %c0_29] : memref<1x4x4x4xf32, #tpu.memory_space<vmem>>, vector<1x1x4x4xf32>
      %28 = vector.shape_cast %27 : vector<1x1x4x4xf32> to vector<4x4xf32>
      %cst_30 = arith.constant dense<0.000000e+00> : vector<4x50xf32>
      %29 = tpu.matmul %28, %15, %cst_30 {dimension_numbers = #tpu.dot_dimension_numbers<[1], [0], [0], [1], [0, 0, 1, 1], [], []>} : vector<4x4xf32>, vector<4x50xf32>, vector<4x50xf32> -> vector<4x50xf32>
      %30 = arith.addf %26, %29 : vector<4x50xf32>
      %c1_31 = arith.constant 1 : index
      %c0_32 = arith.constant 0 : index
      %c0_33 = arith.constant 0 : index
      %31 = vector.load %arg9[%c1_31, %c0_32, %c0_33] : memref<4x4x50xf32, #tpu.memory_space<vmem>>, vector<1x4x50xf32>
      %32 = vector.shape_cast %31 : vector<1x4x50xf32> to vector<4x50xf32>
      %33 = vector.shape_cast %30 : vector<4x50xf32> to vector<1x4x50xf32>
      tpu.vector_store %arg9[%c1_31, %c0_32, %c0_33], %33 {strides = array<i32>} : memref<4x4x50xf32, #tpu.memory_space<vmem>>, vector<1x4x50xf32>,
      %c2 = arith.constant 2 : index
      %c0_34 = arith.constant 0 : index
      %c0_35 = arith.constant 0 : index
      %34 = vector.load %arg9[%c2, %c0_34, %c0_35] : memref<4x4x50xf32, #tpu.memory_space<vmem>>, vector<1x4x50xf32>
      %35 = vector.shape_cast %34 : vector<1x4x50xf32> to vector<4x50xf32>
      %c0_36 = arith.constant 0 : index
      %c2_37 = arith.constant 2 : index
      %c0_38 = arith.constant 0 : index
      %c0_39 = arith.constant 0 : index
      %36 = vector.load %arg4[%c0_36, %c2_37, %c0_38, %c0_39] : memref<1x4x4x4xf32, #tpu.memory_space<vmem>>, vector<1x1x4x4xf32>
      %37 = vector.shape_cast %36 : vector<1x1x4x4xf32> to vector<4x4xf32>
      %cst_40 = arith.constant dense<0.000000e+00> : vector<4x50xf32>
      %38 = tpu.matmul %37, %15, %cst_40 {dimension_numbers = #tpu.dot_dimension_numbers<[1], [0], [0], [1], [0, 0, 1, 1], [], []>} : vector<4x4xf32>, vector<4x50xf32>, vector<4x50xf32> -> vector<4x50xf32>
      %39 = arith.addf %35, %38 : vector<4x50xf32>
      %c2_41 = arith.constant 2 : index
      %c0_42 = arith.constant 0 : index
      %c0_43 = arith.constant 0 : index
      %40 = vector.load %arg9[%c2_41, %c0_42, %c0_43] : memref<4x4x50xf32, #tpu.memory_space<vmem>>, vector<1x4x50xf32>
      %41 = vector.shape_cast %40 : vector<1x4x50xf32> to vector<4x50xf32>
      %42 = vector.shape_cast %39 : vector<4x50xf32> to vector<1x4x50xf32>
      tpu.vector_store %arg9[%c2_41, %c0_42, %c0_43], %42 {strides = array<i32>} : memref<4x4x50xf32, #tpu.memory_space<vmem>>, vector<1x4x50xf32>,
      %c3 = arith.constant 3 : index
      %c0_44 = arith.constant 0 : index
      %c0_45 = arith.constant 0 : index
      %43 = vector.load %arg9[%c3, %c0_44, %c0_45] : memref<4x4x50xf32, #tpu.memory_space<vmem>>, vector<1x4x50xf32>
      %44 = vector.shape_cast %43 : vector<1x4x50xf32> to vector<4x50xf32>
      %c0_46 = arith.constant 0 : index
      %c3_47 = arith.constant 3 : index
      %c0_48 = arith.constant 0 : index
      %c0_49 = arith.constant 0 : index
      %45 = vector.load %arg4[%c0_46, %c3_47, %c0_48, %c0_49] : memref<1x4x4x4xf32, #tpu.memory_space<vmem>>, vector<1x1x4x4xf32>
      %46 = vector.shape_cast %45 : vector<1x1x4x4xf32> to vector<4x4xf32>
      %cst_50 = arith.constant dense<0.000000e+00> : vector<4x50xf32>
      %47 = tpu.matmul %46, %15, %cst_50 {dimension_numbers = #tpu.dot_dimension_numbers<[1], [0], [0], [1], [0, 0, 1, 1], [], []>} : vector<4x4xf32>, vector<4x50xf32>, vector<4x50xf32> -> vector<4x50xf32>
      %48 = arith.addf %44, %47 : vector<4x50xf32>
      %c3_51 = arith.constant 3 : index
      %c0_52 = arith.constant 0 : index
      %c0_53 = arith.constant 0 : index
      %49 = vector.load %arg9[%c3_51, %c0_52, %c0_53] : memref<4x4x50xf32, #tpu.memory_space<vmem>>, vector<1x4x50xf32>
      %50 = vector.shape_cast %49 : vector<1x4x50xf32> to vector<4x50xf32>
      %51 = vector.shape_cast %48 : vector<4x50xf32> to vector<1x4x50xf32>
      tpu.vector_store %arg9[%c3_51, %c0_52, %c0_53], %51 {strides = array<i32>} : memref<4x4x50xf32, #tpu.memory_space<vmem>>, vector<1x4x50xf32>,
    } else {
    }
    %c1_i32_2 = arith.constant 1 : i32
    %6 = arith.cmpi sge, %arg1, %c1_i32_2 : i32
    %7 = arith.extui %6 : i1 to i32
    %c0_i32_3 = arith.constant 0 : i32
    %8 = arith.cmpi ne, %7, %c0_i32_3 : i32
    scf.if %8 {
      %c1_i32_4 = arith.constant 1 : i32
      %9 = arith.subi %arg1, %c1_i32_4 : i32
      %10 = arith.index_cast %9 : i32 to index
      %c0 = arith.constant 0 : index
      %c0_5 = arith.constant 0 : index
      %11 = vector.load %arg9[%10, %c0, %c0_5] : memref<4x4x50xf32, #tpu.memory_space<vmem>>, vector<1x4x50xf32>
      %12 = vector.shape_cast %11 : vector<1x4x50xf32> to vector<4x50xf32>
      %c0_6 = arith.constant 0 : index
      %c0_7 = arith.constant 0 : index
      %c0_8 = arith.constant 0 : index
      %13 = vector.load %arg5[%c0_6, %c0_7, %c0_8] : memref<1x4x50xf32, #tpu.memory_space<vmem>>, vector<1x4x50xf32>
      %14 = vector.shape_cast %13 : vector<1x4x50xf32> to vector<4x50xf32>
      %15 = arith.addf %12, %14 : vector<4x50xf32>
      %cst = arith.constant 0.000000e+00 : f32
      %16 = vector.broadcast %cst : f32 to vector<4x50xf32>
      %17 = arith.maximumf %15, %16 : vector<4x50xf32>
      %c0_9 = arith.constant 0 : index
      %c0_10 = arith.constant 0 : index
      %c0_11 = arith.constant 0 : index
      %18 = vector.load %arg6[%c0_9, %c0_10, %c0_11] : memref<1x4x50xf32, #tpu.memory_space<vmem>>, vector<1x4x50xf32>
      %19 = vector.shape_cast %18 : vector<1x4x50xf32> to vector<4x50xf32>
      %20 = arith.mulf %17, %19 : vector<4x50xf32>
      %c0_12 = arith.constant 0 : index
      %c0_13 = arith.constant 0 : index
      %21 = vector.load %arg7[%c0_12, %c0_13] : memref<50x256xf32, #tpu.memory_space<vmem>>, vector<50x256xf32>
      %cst_14 = arith.constant dense<0.000000e+00> : vector<4x256xf32>
      %22 = tpu.matmul %20, %21, %cst_14 {dimension_numbers = #tpu.dot_dimension_numbers<[1], [0], [0], [1], [0, 0, 1, 1], [], []>} : vector<4x50xf32>, vector<50x256xf32>, vector<4x256xf32> -> vector<4x256xf32>
      %c0_15 = arith.constant 0 : index
      %c0_16 = arith.constant 0 : index
      %c0_17 = arith.constant 0 : index
      %c0_18 = arith.constant 0 : index
      %23 = vector.load %arg8[%c0_15, %c0_16, %c0_17, %c0_18] : memref<1x1x4x256xf32, #tpu.memory_space<vmem>>, vector<1x1x4x256xf32>
      %24 = vector.shape_cast %23 : vector<1x1x4x256xf32> to vector<4x256xf32>
      %25 = vector.shape_cast %22 : vector<4x256xf32> to vector<1x1x4x256xf32>
      tpu.vector_store %arg8[%c0_15, %c0_16, %c0_17, %c0_18], %25 {strides = array<i32>} : memref<1x1x4x256xf32, #tpu.memory_space<vmem>>, vector<1x1x4x256xf32>,
    } else {
    }
    return
  }
  func.func @transform_0(%arg0: i32, %arg1: i32) -> (i32, i32, i32, i32) {
    %c0_i32 = arith.constant 0 : i32
    %0 = arith.minsi %arg1, %c0_i32 : i32
    %c0_i32_0 = arith.constant 0 : i32
    %c0_i32_1 = arith.constant 0 : i32
    %c0_i32_2 = arith.constant 0 : i32
    return %arg0, %0, %c0_i32_0, %c0_i32_1 : i32, i32, i32, i32
  }
  func.func @transform_1(%arg0: i32, %arg1: i32) -> (i32, i32) {
    %c0_i32 = arith.constant 0 : i32
    %c0_i32_0 = arith.constant 0 : i32
    %c0_i32_1 = arith.constant 0 : i32
    return %c0_i32, %c0_i32_0 : i32, i32
  }
  func.func @transform_2(%arg0: i32, %arg1: i32) -> (i32, i32, i32, i32) {
    %c0_i32 = arith.constant 0 : i32
    %0 = arith.minsi %arg1, %c0_i32 : i32
    %c0_i32_0 = arith.constant 0 : i32
    %c0_i32_1 = arith.constant 0 : i32
    %c0_i32_2 = arith.constant 0 : i32
    %c0_i32_3 = arith.constant 0 : i32
    return %0, %c0_i32_0, %c0_i32_1, %c0_i32_2 : i32, i32, i32, i32
  }
  func.func @transform_3(%arg0: i32, %arg1: i32) -> (i32, i32, i32) {
    %c1_i32 = arith.constant 1 : i32
    %0 = arith.subi %arg1, %c1_i32 : i32
    %c0_i32 = arith.constant 0 : i32
    %1 = arith.maxsi %0, %c0_i32 : i32
    %c0_i32_0 = arith.constant 0 : i32
    %c0_i32_1 = arith.constant 0 : i32
    %c0_i32_2 = arith.constant 0 : i32
    return %1, %c0_i32_0, %c0_i32_1 : i32, i32, i32
  }
  func.func @transform_4(%arg0: i32, %arg1: i32) -> (i32, i32, i32) {
    %c1_i32 = arith.constant 1 : i32
    %0 = arith.subi %arg1, %c1_i32 : i32
    %c0_i32 = arith.constant 0 : i32
    %1 = arith.maxsi %0, %c0_i32 : i32
    %c0_i32_0 = arith.constant 0 : i32
    %c0_i32_1 = arith.constant 0 : i32
    %c0_i32_2 = arith.constant 0 : i32
    return %1, %c0_i32_0, %c0_i32_1 : i32, i32, i32
  }
  func.func @transform_5(%arg0: i32, %arg1: i32) -> (i32, i32) {
    %c0_i32 = arith.constant 0 : i32
    %c0_i32_0 = arith.constant 0 : i32
    %c0_i32_1 = arith.constant 0 : i32
    return %c0_i32, %c0_i32_0 : i32, i32
  }
  func.func @transform_6(%arg0: i32, %arg1: i32) -> (i32, i32, i32, i32) {
    %c0_i32 = arith.constant 0 : i32
    %c0_i32_0 = arith.constant 0 : i32
    %c0_i32_1 = arith.constant 0 : i32
    return %arg0, %arg1, %c0_i32, %c0_i32_0 : i32, i32, i32, i32
  }
}

module attributes {stable_mosaic.version = 11 : i64} {
  func.func @kernel(%arg0: i32, %arg1: i32, %arg2: memref<1x1x4x256xf32, #tpu.memory_space<vmem>>, %arg3: memref<256x50xf32, #tpu.memory_space<vmem>>, %arg4: memref<1x4x4x4xf32, #tpu.memory_space<vmem>>, %arg5: memref<1x4x50xf32, #tpu.memory_space<vmem>>, %arg6: memref<1x4x50xf32, #tpu.memory_space<vmem>>, %arg7: memref<50x256xf32, #tpu.memory_space<vmem>>, %arg8: memref<1x1x4x256xf32, #tpu.memory_space<vmem>>, %arg9: memref<4x4x50xf32, #tpu.memory_space<vmem>>) attributes {dimension_semantics = [#tpu.dimension_semantics<parallel>, #tpu.dimension_semantics<arbitrary>], iteration_bounds = array<i64: 2, 5>, scalar_prefetch = 0 : i64, scratch_operands = 1 : i64, tpu.core_type = #tpu.core_type<tc>, window_params = [{transform_indices = @transform_0, window_bounds = array<i64: 1, 1, 4, 256>}, {pipeline_mode = #tpu.pipeline_mode<synchronous>, transform_indices = @transform_1, window_bounds = array<i64: 256, 50>}, {transform_indices = @transform_2, window_bounds = array<i64: 1, 4, 4, 4>}, {transform_indices = @transform_3, window_bounds = array<i64: 1, 4, 50>}, {transform_indices = @transform_4, window_bounds = array<i64: 1, 4, 50>}, {pipeline_mode = #tpu.pipeline_mode<synchronous>, transform_indices = @transform_5, window_bounds = array<i64: 50, 256>}, {transform_indices = @transform_6, window_bounds = array<i64: 1, 1, 4, 256>}]} {
    %c0_i32 = arith.constant 0 : i32
    %0 = arith.cmpi eq, %arg1, %c0_i32 : i32
    %1 = arith.extui %0 : i1 to i32
    %c0_i32_0 = arith.constant 0 : i32
    %2 = arith.cmpi ne, %1, %c0_i32_0 : i32
    scf.if %2 {
      %cst = arith.constant 0.000000e+00 : f32
      %9 = vector.broadcast %cst : f32 to vector<4x4x50xf32>
      %c0 = arith.constant 0 : index
      %c0_4 = arith.constant 0 : index
      %c0_5 = arith.constant 0 : index
      %10 = vector.load %arg9[%c0, %c0_4, %c0_5] : memref<4x4x50xf32, #tpu.memory_space<vmem>>, vector<4x4x50xf32>
      tpu.vector_store %arg9[%c0, %c0_4, %c0_5], %9 {strides = array<i32>} : memref<4x4x50xf32, #tpu.memory_space<vmem>>, vector<4x4x50xf32>,
    } else {
    }
    %c1_i32 = arith.constant 1 : i32
    %3 = arith.cmpi slt, %arg1, %c1_i32 : i32
    %4 = arith.extui %3 : i1 to i32
    %c0_i32_1 = arith.constant 0 : i32
    %5 = arith.cmpi ne, %4, %c0_i32_1 : i32
    scf.if %5 {
      %c0 = arith.constant 0 : index
      %c0_4 = arith.constant 0 : index
      %c0_5 = arith.constant 0 : index
      %c0_6 = arith.constant 0 : index
      %9 = vector.load %arg2[%c0, %c0_4, %c0_5, %c0_6] : memref<1x1x4x256xf32, #tpu.memory_space<vmem>>, vector<1x1x4x256xf32>
      %10 = vector.shape_cast %9 : vector<1x1x4x256xf32> to vector<4x256xf32>
      %c0_7 = arith.constant 0 : index
      %c0_8 = arith.constant 0 : index
      %c0_9 = arith.constant 0 : index
      %c0_10 = arith.constant 0 : index
      %11 = vector.load %arg8[%c0_7, %c0_8, %c0_9, %c0_10] : memref<1x1x4x256xf32, #tpu.memory_space<vmem>>, vector<1x1x4x256xf32>
      %12 = vector.shape_cast %11 : vector<1x1x4x256xf32> to vector<4x256xf32>
      %13 = vector.shape_cast %10 : vector<4x256xf32> to vector<1x1x4x256xf32>
      tpu.vector_store %arg8[%c0_7, %c0_8, %c0_9, %c0_10], %13 {strides = array<i32>} : memref<1x1x4x256xf32, #tpu.memory_space<vmem>>, vector<1x1x4x256xf32>,
      %c0_11 = arith.constant 0 : index
      %c0_12 = arith.constant 0 : index
      %14 = vector.load %arg3[%c0_11, %c0_12] : memref<256x50xf32, #tpu.memory_space<vmem>>, vector<256x50xf32>
      %cst = arith.constant dense<0.000000e+00> : vector<4x50xf32>
      %15 = tpu.matmul %10, %14, %cst {dimension_numbers = #tpu.dot_dimension_numbers<[1], [0], [0], [1], [0, 0, 1, 1], [], []>} : vector<4x256xf32>, vector<256x50xf32>, vector<4x50xf32> -> vector<4x50xf32>
      %c0_13 = arith.constant 0 : index
      %c0_14 = arith.constant 0 : index
      %c0_15 = arith.constant 0 : index
      %16 = vector.load %arg9[%c0_13, %c0_14, %c0_15] : memref<4x4x50xf32, #tpu.memory_space<vmem>>, vector<1x4x50xf32>
      %17 = vector.shape_cast %16 : vector<1x4x50xf32> to vector<4x50xf32>
      %c0_16 = arith.constant 0 : index
      %c0_17 = arith.constant 0 : index
      %c0_18 = arith.constant 0 : index
      %c0_19 = arith.constant 0 : index
      %18 = vector.load %arg4[%c0_16, %c0_17, %c0_18, %c0_19] : memref<1x4x4x4xf32, #tpu.memory_space<vmem>>, vector<1x1x4x4xf32>
      %19 = vector.shape_cast %18 : vector<1x1x4x4xf32> to vector<4x4xf32>
      %cst_20 = arith.constant dense<0.000000e+00> : vector<4x50xf32>
      %20 = tpu.matmul %19, %15, %cst_20 {dimension_numbers = #tpu.dot_dimension_numbers<[1], [0], [0], [1], [0, 0, 1, 1], [], []>} : vector<4x4xf32>, vector<4x50xf32>, vector<4x50xf32> -> vector<4x50xf32>
      %21 = arith.addf %17, %20 : vector<4x50xf32>
      %c0_21 = arith.constant 0 : index
      %c0_22 = arith.constant 0 : index
      %c0_23 = arith.constant 0 : index
      %22 = vector.load %arg9[%c0_21, %c0_22, %c0_23] : memref<4x4x50xf32, #tpu.memory_space<vmem>>, vector<1x4x50xf32>
      %23 = vector.shape_cast %22 : vector<1x4x50xf32> to vector<4x50xf32>
      %24 = vector.shape_cast %21 : vector<4x50xf32> to vector<1x4x50xf32>
      tpu.vector_store %arg9[%c0_21, %c0_22, %c0_23], %24 {strides = array<i32>} : memref<4x4x50xf32, #tpu.memory_space<vmem>>, vector<1x4x50xf32>,
      %c1 = arith.constant 1 : index
      %c0_24 = arith.constant 0 : index
      %c0_25 = arith.constant 0 : index
      %25 = vector.load %arg9[%c1, %c0_24, %c0_25] : memref<4x4x50xf32, #tpu.memory_space<vmem>>, vector<1x4x50xf32>
      %26 = vector.shape_cast %25 : vector<1x4x50xf32> to vector<4x50xf32>
      %c0_26 = arith.constant 0 : index
      %c1_27 = arith.constant 1 : index
      %c0_28 = arith.constant 0 : index
      %c0_29 = arith.constant 0 : index
      %27 = vector.load %arg4[%c0_26, %c1_27, %c0_28, %c0_29] : memref<1x4x4x4xf32, #tpu.memory_space<vmem>>, vector<1x1x4x4xf32>
      %28 = vector.shape_cast %27 : vector<1x1x4x4xf32> to vector<4x4xf32>
      %cst_30 = arith.constant dense<0.000000e+00> : vector<4x50xf32>
      %29 = tpu.matmul %28, %15, %cst_30 {dimension_numbers = #tpu.dot_dimension_numbers<[1], [0], [0], [1], [0, 0, 1, 1], [], []>} : vector<4x4xf32>, vector<4x50xf32>, vector<4x50xf32> -> vector<4x50xf32>
      %30 = arith.addf %26, %29 : vector<4x50xf32>
      %c1_31 = arith.constant 1 : index
      %c0_32 = arith.constant 0 : index
      %c0_33 = arith.constant 0 : index
      %31 = vector.load %arg9[%c1_31, %c0_32, %c0_33] : memref<4x4x50xf32, #tpu.memory_space<vmem>>, vector<1x4x50xf32>
      %32 = vector.shape_cast %31 : vector<1x4x50xf32> to vector<4x50xf32>
      %33 = vector.shape_cast %30 : vector<4x50xf32> to vector<1x4x50xf32>
      tpu.vector_store %arg9[%c1_31, %c0_32, %c0_33], %33 {strides = array<i32>} : memref<4x4x50xf32, #tpu.memory_space<vmem>>, vector<1x4x50xf32>,
      %c2 = arith.constant 2 : index
      %c0_34 = arith.constant 0 : index
      %c0_35 = arith.constant 0 : index
      %34 = vector.load %arg9[%c2, %c0_34, %c0_35] : memref<4x4x50xf32, #tpu.memory_space<vmem>>, vector<1x4x50xf32>
      %35 = vector.shape_cast %34 : vector<1x4x50xf32> to vector<4x50xf32>
      %c0_36 = arith.constant 0 : index
      %c2_37 = arith.constant 2 : index
      %c0_38 = arith.constant 0 : index
      %c0_39 = arith.constant 0 : index
      %36 = vector.load %arg4[%c0_36, %c2_37, %c0_38, %c0_39] : memref<1x4x4x4xf32, #tpu.memory_space<vmem>>, vector<1x1x4x4xf32>
      %37 = vector.shape_cast %36 : vector<1x1x4x4xf32> to vector<4x4xf32>
      %cst_40 = arith.constant dense<0.000000e+00> : vector<4x50xf32>
      %38 = tpu.matmul %37, %15, %cst_40 {dimension_numbers = #tpu.dot_dimension_numbers<[1], [0], [0], [1], [0, 0, 1, 1], [], []>} : vector<4x4xf32>, vector<4x50xf32>, vector<4x50xf32> -> vector<4x50xf32>
      %39 = arith.addf %35, %38 : vector<4x50xf32>
      %c2_41 = arith.constant 2 : index
      %c0_42 = arith.constant 0 : index
      %c0_43 = arith.constant 0 : index
      %40 = vector.load %arg9[%c2_41, %c0_42, %c0_43] : memref<4x4x50xf32, #tpu.memory_space<vmem>>, vector<1x4x50xf32>
      %41 = vector.shape_cast %40 : vector<1x4x50xf32> to vector<4x50xf32>
      %42 = vector.shape_cast %39 : vector<4x50xf32> to vector<1x4x50xf32>
      tpu.vector_store %arg9[%c2_41, %c0_42, %c0_43], %42 {strides = array<i32>} : memref<4x4x50xf32, #tpu.memory_space<vmem>>, vector<1x4x50xf32>,
      %c3 = arith.constant 3 : index
      %c0_44 = arith.constant 0 : index
      %c0_45 = arith.constant 0 : index
      %43 = vector.load %arg9[%c3, %c0_44, %c0_45] : memref<4x4x50xf32, #tpu.memory_space<vmem>>, vector<1x4x50xf32>
      %44 = vector.shape_cast %43 : vector<1x4x50xf32> to vector<4x50xf32>
      %c0_46 = arith.constant 0 : index
      %c3_47 = arith.constant 3 : index
      %c0_48 = arith.constant 0 : index
      %c0_49 = arith.constant 0 : index
      %45 = vector.load %arg4[%c0_46, %c3_47, %c0_48, %c0_49] : memref<1x4x4x4xf32, #tpu.memory_space<vmem>>, vector<1x1x4x4xf32>
      %46 = vector.shape_cast %45 : vector<1x1x4x4xf32> to vector<4x4xf32>
      %cst_50 = arith.constant dense<0.000000e+00> : vector<4x50xf32>
      %47 = tpu.matmul %46, %15, %cst_50 {dimension_numbers = #tpu.dot_dimension_numbers<[1], [0], [0], [1], [0, 0, 1, 1], [], []>} : vector<4x4xf32>, vector<4x50xf32>, vector<4x50xf32> -> vector<4x50xf32>
      %48 = arith.addf %44, %47 : vector<4x50xf32>
      %c3_51 = arith.constant 3 : index
      %c0_52 = arith.constant 0 : index
      %c0_53 = arith.constant 0 : index
      %49 = vector.load %arg9[%c3_51, %c0_52, %c0_53] : memref<4x4x50xf32, #tpu.memory_space<vmem>>, vector<1x4x50xf32>
      %50 = vector.shape_cast %49 : vector<1x4x50xf32> to vector<4x50xf32>
      %51 = vector.shape_cast %48 : vector<4x50xf32> to vector<1x4x50xf32>
      tpu.vector_store %arg9[%c3_51, %c0_52, %c0_53], %51 {strides = array<i32>} : memref<4x4x50xf32, #tpu.memory_space<vmem>>, vector<1x4x50xf32>,
    } else {
    }
    %c1_i32_2 = arith.constant 1 : i32
    %6 = arith.cmpi sge, %arg1, %c1_i32_2 : i32
    %7 = arith.extui %6 : i1 to i32
    %c0_i32_3 = arith.constant 0 : i32
    %8 = arith.cmpi ne, %7, %c0_i32_3 : i32
    scf.if %8 {
      %c1_i32_4 = arith.constant 1 : i32
      %9 = arith.subi %arg1, %c1_i32_4 : i32
      %10 = arith.index_cast %9 : i32 to index
      %c0 = arith.constant 0 : index
      %c0_5 = arith.constant 0 : index
      %11 = vector.load %arg9[%10, %c0, %c0_5] : memref<4x4x50xf32, #tpu.memory_space<vmem>>, vector<1x4x50xf32>
      %12 = vector.shape_cast %11 : vector<1x4x50xf32> to vector<4x50xf32>
      %c0_6 = arith.constant 0 : index
      %c0_7 = arith.constant 0 : index
      %c0_8 = arith.constant 0 : index
      %13 = vector.load %arg5[%c0_6, %c0_7, %c0_8] : memref<1x4x50xf32, #tpu.memory_space<vmem>>, vector<1x4x50xf32>
      %14 = vector.shape_cast %13 : vector<1x4x50xf32> to vector<4x50xf32>
      %15 = arith.addf %12, %14 : vector<4x50xf32>
      %cst = arith.constant 0.000000e+00 : f32
      %16 = vector.broadcast %cst : f32 to vector<4x50xf32>
      %17 = arith.maximumf %15, %16 : vector<4x50xf32>
      %c0_9 = arith.constant 0 : index
      %c0_10 = arith.constant 0 : index
      %c0_11 = arith.constant 0 : index
      %18 = vector.load %arg6[%c0_9, %c0_10, %c0_11] : memref<1x4x50xf32, #tpu.memory_space<vmem>>, vector<1x4x50xf32>
      %19 = vector.shape_cast %18 : vector<1x4x50xf32> to vector<4x50xf32>
      %20 = arith.mulf %17, %19 : vector<4x50xf32>
      %c0_12 = arith.constant 0 : index
      %c0_13 = arith.constant 0 : index
      %21 = vector.load %arg7[%c0_12, %c0_13] : memref<50x256xf32, #tpu.memory_space<vmem>>, vector<50x256xf32>
      %cst_14 = arith.constant dense<0.000000e+00> : vector<4x256xf32>
      %22 = tpu.matmul %20, %21, %cst_14 {dimension_numbers = #tpu.dot_dimension_numbers<[1], [0], [0], [1], [0, 0, 1, 1], [], []>} : vector<4x50xf32>, vector<50x256xf32>, vector<4x256xf32> -> vector<4x256xf32>
      %c0_15 = arith.constant 0 : index
      %c0_16 = arith.constant 0 : index
      %c0_17 = arith.constant 0 : index
      %c0_18 = arith.constant 0 : index
      %23 = vector.load %arg8[%c0_15, %c0_16, %c0_17, %c0_18] : memref<1x1x4x256xf32, #tpu.memory_space<vmem>>, vector<1x1x4x256xf32>
      %24 = vector.shape_cast %23 : vector<1x1x4x256xf32> to vector<4x256xf32>
      %25 = vector.shape_cast %22 : vector<4x256xf32> to vector<1x1x4x256xf32>
      tpu.vector_store %arg8[%c0_15, %c0_16, %c0_17, %c0_18], %25 {strides = array<i32>} : memref<1x1x4x256xf32, #tpu.memory_space<vmem>>, vector<1x1x4x256xf32>,
    } else {
    }
    return
  }
  func.func @transform_0(%arg0: i32, %arg1: i32) -> (i32, i32, i32, i32) {
    %c0_i32 = arith.constant 0 : i32
    %0 = arith.minsi %arg1, %c0_i32 : i32
    %c0_i32_0 = arith.constant 0 : i32
    %c0_i32_1 = arith.constant 0 : i32
    %c0_i32_2 = arith.constant 0 : i32
    return %arg0, %0, %c0_i32_0, %c0_i32_1 : i32, i32, i32, i32
  }
  func.func @transform_1(%arg0: i32, %arg1: i32) -> (i32, i32) {
    %c0_i32 = arith.constant 0 : i32
    %c0_i32_0 = arith.constant 0 : i32
    %c0_i32_1 = arith.constant 0 : i32
    return %c0_i32, %c0_i32_0 : i32, i32
  }
  func.func @transform_2(%arg0: i32, %arg1: i32) -> (i32, i32, i32, i32) {
    %c0_i32 = arith.constant 0 : i32
    %0 = arith.minsi %arg1, %c0_i32 : i32
    %c0_i32_0 = arith.constant 0 : i32
    %c0_i32_1 = arith.constant 0 : i32
    %c0_i32_2 = arith.constant 0 : i32
    %c0_i32_3 = arith.constant 0 : i32
    return %0, %c0_i32_0, %c0_i32_1, %c0_i32_2 : i32, i32, i32, i32
  }
  func.func @transform_3(%arg0: i32, %arg1: i32) -> (i32, i32, i32) {
    %c1_i32 = arith.constant 1 : i32
    %0 = arith.subi %arg1, %c1_i32 : i32
    %c0_i32 = arith.constant 0 : i32
    %1 = arith.maxsi %0, %c0_i32 : i32
    %c0_i32_0 = arith.constant 0 : i32
    %c0_i32_1 = arith.constant 0 : i32
    %c0_i32_2 = arith.constant 0 : i32
    return %1, %c0_i32_0, %c0_i32_1 : i32, i32, i32
  }
  func.func @transform_4(%arg0: i32, %arg1: i32) -> (i32, i32, i32) {
    %c1_i32 = arith.constant 1 : i32
    %0 = arith.subi %arg1, %c1_i32 : i32
    %c0_i32 = arith.constant 0 : i32
    %1 = arith.maxsi %0, %c0_i32 : i32
    %c0_i32_0 = arith.constant 0 : i32
    %c0_i32_1 = arith.constant 0 : i32
    %c0_i32_2 = arith.constant 0 : i32
    return %1, %c0_i32_0, %c0_i32_1 : i32, i32, i32
  }
  func.func @transform_5(%arg0: i32, %arg1: i32) -> (i32, i32) {
    %c0_i32 = arith.constant 0 : i32
    %c0_i32_0 = arith.constant 0 : i32
    %c0_i32_1 = arith.constant 0 : i32
    return %c0_i32, %c0_i32_0 : i32, i32
  }
  func.func @transform_6(%arg0: i32, %arg1: i32) -> (i32, i32, i32, i32) {
    %c0_i32 = arith.constant 0 : i32
    %c0_i32_0 = arith.constant 0 : i32
    %c0_i32_1 = arith.constant 0 : i32
    return %arg0, %arg1, %c0_i32, %c0_i32_0 : i32, i32, i32, i32
  }
}

</mosaic_0001>

<bundles_post_ra>
// kernel: tpu_custom_call.1
= control target key start
LH: loop header
LB: loop body
LE: loop exit
PB: predicated region body
PF: predicated region fallthrough
CT: control target
= control target key end

     0   :  { %11 = vsyncpa [#allocation4], 0  ;;  %s1412_s0 = inlined_call_operand.vmem [shape: f32[2,1,4,256], index: 0, kind: input, shape index: {}]   ;;  %s1413_s1 = inlined_call_operand.vmem [shape: f32[256,50], index: 1, kind: input, shape index: {}]   ;;  %s1414_s2 = inlined_call_operand.vmem [shape: f32[1,4,4,4], index: 2, kind: input, shape index: {}]   ;;  %s1415_s3 = inlined_call_operand.vmem [shape: f32[4,4,50], index: 3, kind: input, shape index: {}]   ;;  %s1416_s4 = inlined_call_operand.vmem [shape: f32[4,4,50], index: 4, kind: input, shape index: {}]   ;;  %s1417_s5 = inlined_call_operand.vmem [shape: f32[50,256], index: 5, kind: input, shape index: {}]   ;;  %s1418_s6 = inlined_call_operand.hbm [shape: f32[2,5,4,256], index: 6, kind: output, shape index: {}]  }
   0x1   :  { %13 = vsyncpa [#allocation4 + $0x1], 0  ;;  %s1109_s21 = smov 0   ;;  %s1111_s22 = smov 0  }
   0x2   :  { %s1113_s23 = smov 0   ;;  %s1115_s24 = smov 0  }
   0x3   :  { %s1117_s25 = smov 0   ;;  %s1119_s26 = smov 0  }
   0x4   :  { %s1121_s27 = smov 0   ;;  %s1123_s28 = smov 0  }
   0x5 LB: > { %1426 = sst [smem:[#allocation6_spill]] %s1051_s23  ;;  %s839_s29 = sadd.s32 4294967295, %s1071_s28   ;;  %s1071_s28 = sphi %s1123_s28, %s19_s28   ;;  %s1067_s27 = sphi %s1121_s27, %s1442_s27   ;;  %s1063_s26 = sphi %s1119_s26, %s1441_s26   ;;  %s1059_s25 = sphi %s1117_s25, %s1440_s25   ;;  %s1055_s24 = sphi %s1115_s24, %s1439_s24   ;;  %s1051_s23 = sphi %s1113_s23, %s1438_s23   ;;  %s1047_s22 = sphi %s1111_s22, %s1444_s22   ;;  %s1043_s21 = sphi %s1109_s21, %s1443_s21  }
   0x6   : > { %1427 = sst [smem:[#allocation7_spill]] %s1063_s26  ;;  %s840_s30 = sadd.s32 4294967294, %s1071_s28  }
   0x7   : > { %1428 = sst [smem:[#allocation8_spill]] %s1067_s27  ;;  %s28_s7 = sadd.s32 1, %s1063_s26 }
   0x8   : > { %p29_p0 = scmp.ge.s32.totalorder %s28_s7, 5  ;;  %s31_s8 = sadd.s32 1, %s1067_s27 }
   0x9   : > { %p218_p1 = scmp.ne.s32.totalorder %s1051_s23, %s1047_s22  ;;  %p219_p2 = scmp.eq.s32.totalorder %s839_s29, 9 }
   0xa   : > { %s1446_s7 = smov (%p29_p0, %s28_s7), 0  ;;  %s1448_s8 = smov (!%p29_p0, %s31_s8), %s1067_s27 }
   0xb   : > { %1429 = sst [smem:[#allocation9_spill]] %s1446_s7  ;;  %s204_s9 = ssub.s32 %s1063_s26, %s1446_s7 }
   0xc   : > { %p1160_p3 = por %p219_p2, %p218_p1  ;;  %p33_p4 = scmp.ge.s32.totalorder %s1448_s8, 2 }
   0xd   : > { %p224_p5 = scmp.ne.s32.totalorder %s1047_s22, %s1043_s21  ;;  %p225_p6 = scmp.eq.s32.totalorder %s840_s30, 9 }
   0xe   : > { %p847_p7 = scmp.ge.s32.totalorder %s1071_s28, 1  ;;  %s1450_s8 = smov (%p33_p4, %s1448_s8), 0 }
   0xf   : > { %1431 = sst [smem:[#allocation10_spill]] %s1450_s8  ;;  %p1169_p8 = por %p225_p6, %p224_p5 }
  0x10   : > { %p303_p9 = scmp.lt.s32.totalorder %s1071_s28, 11  ;;  %s203_s12 = ssub.s32 %s1067_s27, %s1450_s8 }
  0x11   : > { %s1432_s11 = scalar_select %p1169_p8, 1, 0 }
  0x12   : > { %s208_s13 = sadd.s32 1, %s1051_s23  ;;  %s205_s14 = sor.u32 %s204_s9, %s203_s12 }
  0x13   : > { %1433 = sst [smem:[#allocation11_spill]] %s1432_s11  ;;  %p304_p10 = pnand %p847_p7, %p303_p9 }
  0x14   : > { %p206_p11 = scmp.eq.s32.totalorder %s205_s14, 0  ;;  %s1420_s16 = sand.u32 (!%p304_p10), 1, %s1047_s22  }
  0x15   : > { %307 = sbr.rel (%p304_p10) target bundleno = 526 (0x20e), region = 44  ;;  %p360_p12 = scmp.lt.s32.totalorder (!%p304_p10), %s1055_s24, 0 }
  0x16   : > { %s1178_s15 = scalar_select %p206_p11, %s1051_s23, %s208_s13  }
  0x17   : > { %s848_s17 = sshll.u32 (!%p304_p10), %s1420_s16, 3  ;;  %p362_p13 = scmp.lt.s32.totalorder (!%p304_p10), %s1059_s25, 1 }
  0x18   : > { %1434 = sst [smem:[#allocation12_spill]] %s1178_s15  ;;  %s1186_s18 = sadd.s32 (!%p304_p10), 4294967295, %s1055_s24 }
  0x19   : > { %p383_p0 = scmp.gt.s32.totalorder (!%p304_p10), %s1186_s18, 0  ;;  %p861_p1 = scmp.lt.s32.totalorder (!%p304_p10), %s1186_s18, 3 }
  0x1a   : > { %s361_s19 = scalar_select %p360_p12, %s1055_s24, 0 }
  0x1b   : > { %s363_s20 = scalar_select %p362_p13, %s1059_s25, 1 }
  0x1c   : > { %s1452_s19 = smov (!%p360_p12, %s361_s19), 0  ;;  %p874_p2 = scmp.ne.s32.totalorder %s1055_s24, 0 }
  0x1d   : > { %s853_s29 = sshll.u32 %s363_s20, 1  ;;  %s852_s30 = sshll.u32 %s1452_s19, 1 }
  0x1e   : > { %s899_s9 = sshll.u32 %s1452_s19, 4  ;;  %s368_s12 = sadd.s32 %s853_s29, %s852_s30 }
  0x1f   : > { %s1194_s8 = scalar_lea.vmem %s1414_s2, %s899_s9  ;;  %s854_s16 = sshll.u32 %s368_s12, 2 }
  0x20   : > { %s1200_s26 = scalar_lea.vmem %s1412_s0, %s854_s16  ;;  %s1213_s12 = scalar_lea.vmem [#allocation3], %s848_s17 }
  0x21   : > { %s384_s15 = scalar_select %p383_p0, %s1186_s18, 0 }
  0x22   : > { %405 = sbr.rel (%p874_p2) target bundleno = 44 (0x2c), region = 48 }
  0x23   : > { %s1454_s15 = smov (!%p861_p1, %s384_s15), 3 }
  0x24   : > { %s866_s23 = sshll.u32 %s1454_s15, 2 }
  0x25   : > { %s1206_s19 = scalar_lea.vmem %s1415_s3, %s866_s23  ;;  %s1211_s9 = scalar_lea.vmem %s1416_s4, %s866_s23 }
  0x27   : > { %vm406_vm0 = vcmask 404480   ;;  %v1073_v0 = vmov 0.0  }
  0x28   : > { %407 = vst.msk [vmem:[#allocation2] sm:$0xf] %vm406_vm0, %v1073_v0 }
  0x29   : > { %408 = vst.msk [vmem:[#allocation2 + $0x4] sm:$0xf] %vm406_vm0, %v1073_v0 }
  0x2a   : > { %409 = vst.msk [vmem:[#allocation2 + $0x8] sm:$0xf] %vm406_vm0, %v1073_v0 }
  0x2b   : > { %410 = vst.msk [vmem:[#allocation2 + $0xc] sm:$0xf] %vm406_vm0, %v1073_v0 }
  0x2c PF: > { %p875_p4 = scmp.ge.s32.totalorder %s1055_s24, 1 }
  0x2e   : > { %414 = sbr.rel (%p875_p4) target bundleno = 357 (0x165), region = 52 }
  0x33   : > { %v432_v1 = vld [vmem:[%s1413_s1 + $0x78] sm:$0xff]  ;;  %v431_v3 = vld [vmem:[%s1413_s1 + $0x70] sm:$0xff]  ;;  %v430_v5 = vld [vmem:[%s1413_s1 + $0x68] sm:$0xff]  ;;  %vm501_vm1 = vcmask 1043456   ;;  %vm497_vm2 = vcmask 31744   ;;  %vm526_vm3 = vcmask 404480  }
  0x34   : > { %v448_v2 = vld [vmem:[%s1413_s1 + $0xf8] sm:$0xff]  ;;  %455 = vmatpush.msra.mxu0 %v432_v1  ;;  %v447_v4 = vld [vmem:[%s1413_s1 + $0xf0] sm:$0xff]  ;;  %v446_v6 = vld [vmem:[%s1413_s1 + $0xe8] sm:$0xff] }
  0x35   : > { %475 = vmatpush.msra.mxu1 %v448_v2  ;;  %v429_v7 = vld [vmem:[%s1413_s1 + $0x60] sm:$0xff]  ;;  %v428_v9 = vld [vmem:[%s1413_s1 + $0x58] sm:$0xff]  ;;  %v427_v11 = vld [vmem:[%s1413_s1 + $0x50] sm:$0xff] }
  0x36   : > { %456 = vmatpush.msra.mxu0 %v431_v3  ;;  %v445_v8 = vld [vmem:[%s1413_s1 + $0xe0] sm:$0xff]  ;;  %v444_v10 = vld [vmem:[%s1413_s1 + $0xd8] sm:$0xff]  ;;  %v443_v12 = vld [vmem:[%s1413_s1 + $0xd0] sm:$0xff] }
  0x37   : > { %476 = vmatpush.msra.mxu1 %v447_v4  ;;  %v426_v13 = vld [vmem:[%s1413_s1 + $0x48] sm:$0xff]  ;;  %v415_v15 = vld [vmem:[%s1200_s26] sm:$0xff]  ;;  %v424_v18 = vld [vmem:[%s1413_s1 + $0x38] sm:$0xff] }
  0x38   : > { %457 = vmatpush.msra.mxu0 %v430_v5  ;;  %v442_v14 = vld [vmem:[%s1413_s1 + $0xc8] sm:$0xff]  ;;  %416 = vst [vmem:[%s1213_s12] sm:$0xff] %v415_v15  ;;  %v425_v16 = vld [vmem:[%s1413_s1 + $0x40] sm:$0xff]  ;;  %v440_v19 = vld [vmem:[%s1413_s1 + $0xb8] sm:$0xff] }
  0x39   : > { %477 = vmatpush.msra.mxu1 %v446_v6  ;;  %v441_v17 = vld [vmem:[%s1413_s1 + $0xc0] sm:$0xff]  ;;  %450 = vst [vmem:[#allocation1] ss:$2 sm:$0xff] %v415_v15  ;;  %v423_v20 = vld [vmem:[%s1413_s1 + $0x30] sm:$0xff]  ;;  %v422_v22 = vld [vmem:[%s1413_s1 + $0x28] sm:$0xff] }
  0x3a   : > { %458 = vmatpush.msra.mxu0 %v429_v7  ;;  %v439_v21 = vld [vmem:[%s1413_s1 + $0xb0] sm:$0xff]  ;;  %v438_v23 = vld [vmem:[%s1413_s1 + $0xa8] sm:$0xff]  ;;  %v421_v24 = vld [vmem:[%s1413_s1 + $0x20] sm:$0xff] }
  0x3b   : > { %478 = vmatpush.msra.mxu1 %v445_v8  ;;  %v437_v25 = vld [vmem:[%s1413_s1 + $0xa0] sm:$0xff]  ;;  %v420_v26 = vld [vmem:[%s1413_s1 + $0x18] sm:$0xff]  ;;  %v419_v28 = vld [vmem:[%s1413_s1 + $0x10] sm:$0xff] }
  0x3c   : > { %459 = vmatpush.msra.mxu0 %v428_v9  ;;  %v436_v27 = vld [vmem:[%s1413_s1 + $0x98] sm:$0xff]  ;;  %v435_v29 = vld [vmem:[%s1413_s1 + $0x90] sm:$0xff]  ;;  %v418_v30 = vld [vmem:[%s1413_s1 + $0x8] sm:$0xff] }
  0x3d   : > { %479 = vmatpush.msra.mxu1 %v444_v10  ;;  %v434_v31 = vld [vmem:[%s1413_s1 + $0x88] sm:$0xff]  ;;  %v417_v32 = vld [vmem:[%s1413_s1] sm:$0xff]  ;;  %v558_v49 = vld [vmem:[#allocation2 + $0x8] sm:$0xf] }
  0x3e   : > { %460 = vmatpush.msra.mxu0 %v427_v11  ;;  %v433_v33 = vld [vmem:[%s1413_s1 + $0x80] sm:$0xff]  ;;  %v881_v41 = vld [vmem:[%s1194_s8 + $0x8] sm:$0xf]  ;;  %v884_v42 = vld [vmem:[%s1194_s8 + $0xc] sm:$0xf] }
  0x3f   : > { %480 = vmatpush.msra.mxu1 %v443_v12  ;;  %v496_v39 = vld [vmem:[%s1194_s8] sm:$0xf]  ;;  %v878_v40 = vld [vmem:[%s1194_s8 + $0x4] sm:$0xf]  ;;  %v495_v43 = vld [vmem:[#allocation2] sm:$0xf] }
  0x40   : > { %461 = vmatpush.msra.mxu0 %v426_v13  ;;  %v451_v34 = vld.sshfl [vmem:[#allocation1] sm:$0xff pattern:$0x75316420]  ;;  %v452_v35 = vld.sshfl [vmem:[#allocation1 + $0x8] sm:$0xff pattern:$0x75316420] }
  0x41   : > { %481 = vmatpush.msra.mxu1 %v442_v14  ;;  %v529_v44 = vld [vmem:[#allocation2 + $0x4] sm:$0xf]  ;;  %v587_v50 = vld [vmem:[#allocation2 + $0xc] sm:$0xf] }
  0x42   : > { %462 = vmatpush.msra.mxu0 %v425_v16 }
  0x43   : > { %482 = vmatpush.msra.mxu1 %v441_v17 }
  0x44   : > { %463 = vmatpush.msra.mxu0 %v424_v18 }
  0x45   : > { %483 = vmatpush.msra.mxu1 %v440_v19 }
  0x46   : > { %464 = vmatpush.msra.mxu0 %v423_v20 }
  0x47   : > { %484 = vmatpush.msra.mxu1 %v439_v21 }
  0x48   : > { %465 = vmatpush.msra.mxu0 %v422_v22 }
  0x49   : > { %485 = vmatpush.msra.mxu1 %v438_v23 }
  0x4a   : > { %466 = vmatpush.msra.mxu0 %v421_v24 }
  0x4b   : > { %486 = vmatpush.msra.mxu1 %v437_v25 }
  0x4c   : > { %467 = vmatpush.msra.mxu0 %v420_v26 }
  0x4d   : > { %487 = vmatpush.msra.mxu1 %v436_v27 }
  0x4e   : > { %468 = vmatpush.msra.mxu0 %v419_v28 }
  0x4f   : > { %488 = vmatpush.msra.mxu1 %v435_v29 }
  0x50   : > { %469 = vmatpush.msra.mxu0 %v418_v30 }
  0x51   : > { %489 = vmatpush.msra.mxu1 %v434_v31 }
  0x52   : > { %470 = vmatpush.msra.mxu0 %v417_v32 }
  0x53   : > { %490 = vmatpush.msra.mxu1 %v433_v33  ;;  %471 = vmatmul.f32.vlgmr.msra.gmra.mxu0 %v451_v34 }
  0x54   : > { %491 = vmatmul.f32.vlgmr.msra.gmra.mxu1 %v452_v35 }
  0xd0   : > { %v472_v36 = vpop.f32.mrf.mxu0 }
  0xd1   : > { %v492_v37 = vpop.f32.mrf.mxu1 }
  0xd2   : > { %v493_v38 = vadd.f32 %v492_v37, %v472_v36 }
  0xd4   : > { %876 = vmatpush.msk.msra.mxu2 %vm501_vm1, %v493_v38  ;;  %879 = vmatpush.msk.msra.mxu3 %vm501_vm1, %v493_v38 }
  0xd5   : > { %877 = vmatmul.msk.f32.vlgmr.msra.gmra.mxu2 %vm497_vm2, %v496_v39  ;;  %880 = vmatmul.msk.f32.vlgmr.msra.gmra.mxu3 %vm497_vm2, %v878_v40 }
  0xd6   : > { %882 = vmatpush.msk.msrb.mxu2 %vm501_vm1, %v493_v38  ;;  %885 = vmatpush.msk.msrb.mxu3 %vm501_vm1, %v493_v38 }
  0xdd   : > { %883 = vmatmul.msk.f32.vlgmr.msrb.gmra.mxu2 %vm497_vm2, %v881_v41  ;;  %886 = vmatmul.msk.f32.vlgmr.msrb.gmra.mxu3 %vm497_vm2, %v884_v42 }
 0x158   : > { %v522_v45 = vpop.f32.mrf.mxu2  ;;  %v552_v46 = vpop.f32.mrf.mxu3 }
 0x159   : > { %v525_v47 = vadd.f32 %v522_v45, %v495_v43  ;;  %v555_v48 = vadd.f32 %v552_v46, %v529_v44 }
 0x15b   : > { %527 = vst.msk [vmem:[#allocation2] sm:$0xf] %vm526_vm3, %v525_v47 }
 0x15c   : > { %556 = vst.msk [vmem:[#allocation2 + $0x4] sm:$0xf] %vm526_vm3, %v555_v48 }
 0x160   : > { %v581_v51 = vpop.f32.mrf.mxu2  ;;  %v610_v52 = vpop.f32.mrf.mxu3 }
 0x161   : > { %v584_v53 = vadd.f32 %v581_v51, %v558_v49  ;;  %v613_v54 = vadd.f32 %v610_v52, %v587_v50 }
 0x163   : > { %585 = vst.msk [vmem:[#allocation2 + $0x8] sm:$0xf] %vm526_vm3, %v584_v53 }
 0x164   : > { %614 = vst.msk [vmem:[#allocation2 + $0xc] sm:$0xf] %vm526_vm3, %v613_v54 }
 0x165 PF: > { %p887_p5 = scmp.lt.s32.totalorder %s1055_s24, 1 }
 0x166   : > { %s889_s14 = sshll.u32 (!%p887_p5), %s1186_s18, 2 }
 0x167   : > { %618 = sbr.rel (%p887_p5) target bundleno = 508 (0x1fc), region = 56  ;;  %s621_s18 = scalar_lea.vmem (!%p887_p5), [#allocation2], %s889_s14 }
 0x16c   : > { %v641_v55 = vld [vmem:[%s1417_s5 + $0x68] sm:$0x3]  ;;  %vm646_vm4 = vcmask 1041408   ;;  %v640_v56 = vld [vmem:[%s1417_s5 + $0x60] sm:$0x3]  ;;  %v639_v57 = vld [vmem:[%s1417_s5 + $0x58] sm:$0xff] }
 0x16d   : > { %892 = vmatpush.msk.msra.mxu1 %vm646_vm4, %v641_v55  ;;  %890 = vmatpush.msk.msra.mxu0 %vm646_vm4, %v640_v56  ;;  %v638_v58 = vld [vmem:[%s1417_s5 + $0x50] sm:$0xff]  ;;  %v637_v59 = vld [vmem:[%s1417_s5 + $0x48] sm:$0xff]  ;;  %v636_v60 = vld [vmem:[%s1417_s5 + $0x40] sm:$0xff]  ;;  %vm642_vm5 = vcmask 408576   ;;  %vm696_vm6 = vcmask 1043456  }
 0x16e   : > { %v635_v61 = vld [vmem:[%s1417_s5 + $0x38] sm:$0xff]  ;;  %v634_v62 = vld [vmem:[%s1417_s5 + $0x30] sm:$0xff]  ;;  %v622_v63 = vld [vmem:[%s621_s18] sm:$0xf] }
 0x16f   : > { %683 = vmatpush.msra.mxu1 %v639_v57  ;;  %663 = vmatpush.msra.mxu0 %v638_v58  ;;  %v623_v0 = vld [vmem:[%s1206_s19] sm:$0xf]  ;;  %v633_v2 = vld [vmem:[%s1417_s5 + $0x28] sm:$0xff]  ;;  %v631_v6 = vld [vmem:[%s1417_s5 + $0x18] sm:$0xff] }
 0x170   : > { %v624_v1 = vadd.f32 %v623_v0, %v622_v63  ;;  %v632_v3 = vld [vmem:[%s1417_s5 + $0x20] sm:$0xff]  ;;  %v630_v7 = vld [vmem:[%s1417_s5 + $0x10] sm:$0xff]  ;;  %v629_v8 = vld [vmem:[%s1417_s5 + $0x8] sm:$0xff] }
 0x171   : > { %684 = vmatpush.msra.mxu1 %v637_v59  ;;  %664 = vmatpush.msra.mxu0 %v636_v60  ;;  %v626_v5 = vld [vmem:[%s1211_s9] sm:$0xf] }
 0x172   : > { %v625_v4 = vmax.f32 %v624_v1, 0.0  ;;  %v628_v10 = vld [vmem:[%s1417_s5] sm:$0xff] }
 0x173   : > { %685 = vmatpush.msra.mxu1 %v635_v61  ;;  %665 = vmatpush.msra.mxu0 %v634_v62 }
 0x174   : > { %v627_v9 = vmul.f32 %v626_v5, %v625_v4 }
 0x175   : > { %686 = vmatpush.msra.mxu1 %v633_v2  ;;  %666 = vmatpush.msra.mxu0 %v632_v3 }
 0x177   : > { %687 = vmatpush.msra.mxu1 %v631_v6  ;;  %667 = vmatpush.msra.mxu0 %v630_v7 }
 0x179   : > { %688 = vmatpush.msra.mxu1 %v629_v8  ;;  %668 = vmatpush.msra.mxu0 %v628_v10 }
 0x17a   : > { %893 = vmatmul.msk.f32.vlgmr.msra.gmra.mxu1 %vm642_vm5, %v627_v9  ;;  %891 = vmatmul.msk.f32.vlgmr.msra.gmra.mxu0 %vm642_vm5, %v627_v9 }
 0x1f7   : > { %v690_v11 = vpop.f32.mrf.mxu1  ;;  %v670_v12 = vpop.f32.mrf.mxu0 }
 0x1f8   : > { %v695_v13 = vrot.slane %v690_v11, 4 }
 0x1fa   : > { %v697_v14 = vsel %vm696_vm6, %v670_v12, %v695_v13 }
 0x1fb   : > { %699 = vst [vmem:[%s1213_s12] sm:$0xff] %v697_v14 }
 0x1fc PF: > { %s895_s9 = sshll.u32 %s1055_s24, 1  ;;  %s904_s8 = smul.u32 10, %s1059_s25 }
 0x1fd   : > { %s716_s7 = sshll.u32 %s1213_s12, 4  ;;  %s1435_s13 = sand.u32 1, %s1047_s22   ;;  %s717_s7 = int_to_ptr.vmem [resolvable:$true] %s716_s7 }
 0x1fe   : > { %s712_s23 = sadd.s32 %s904_s8, %s895_s9  ;;  %s701_s20 = scalar_lea.sflag [#allocation4], %s1435_s13 }
 0x1ff   : > { %s896_s18 = sshll.u32 %s712_s23, 2  ;;  %s997_s12 = scalar_lea.hbm %s1418_s6, 80 }
 0x200   : > { %s714_s16 = scalar_lea.hbm %s1418_s6, %s896_s18 }
 0x201   : > { %s718_s17 = sshll.u32 %s714_s16, 4  ;;  %s719_s17 = int_to_ptr.hbm [resolvable:$true] %s718_s17 }
 0x202   : > { %s991_s19 = sshra.s32 %s719_s17, 4  ;;  %s992_s19 = int_to_ptr.hbm [resolvable:$true] %s991_s19 }
 0x203   : > { %s993_s14 = scalar_lea.hbm %s992_s19, 8  ;;  %p998_p10 = scmp.lt.s32.totalorder %s992_s19, %s1418_s6 }
 0x204   : > { %p994_p6 = scmp.ne.s32.totalorder %s992_s19, %s993_s14  ;;  %p999_p11 = scmp.lt.s32.totalorder %s997_s12, %s993_s14 }
 0x206   : > { %p995_p7 = pnand %p994_p6, %p1160_p3  ;;  %p1000_p12 = por %p999_p11, %p998_p10 }
 0x208   : > { %p996_p9 = pneg %p995_p7 }
 0x20a   : > { %p1001_p13 = pnand %p1000_p12, %p996_p9 }
 0x20c   : > { %1004 = shalt.err (!%p1001_p13)
}
 0x20d   : > { %905 = dma.vmem_to_hbm [thread:$0]  (%p1160_p3), %s717_s7, 128, %s719_s17, %s701_s20  }
 0x20e PF: > { %p911_p0 = scmp.ge.s32.totalorder %s1071_s28, 2  ;;  %s730_s27 = sand.u32 1, %s1043_s21  }
 0x20f   : > { %s731_s9 = scalar_lea.sflag [#allocation4], %s730_s27 }
 0x210   : > { %p908_p1 = pnand %p911_p0, %p1169_p8 }
 0x212   : > { %p909_p2 = pneg %p908_p1 }
 0x214   : > { %1038 = dma.done.wait (%p909_p2), %s731_s9, 128  }
 0x215   : > { %1040 = vsyncadd (%p909_p2), %s731_s9, 4294967168  ;;  %s19_s28 = sadd.s32 1, %s1071_s28   ;;  %s1437_s8 = sld [smem:[#allocation6_spill]] }
 0x216   : > { %p16_p4 = scmp.ge.s32.totalorder %s19_s28, 12   ;;  %s1438_s23 = sld [smem:[#allocation12_spill]] }
 0x217   : > { %s1439_s24 = sld [smem:[#allocation7_spill]]  ;;  %s1443_s21 = smov %s1047_s22 }
 0x218   : > { %s1440_s25 = sld [smem:[#allocation8_spill]]  ;;  %18 = sbr.rel (!%p16_p4) target bundleno = 5 (0x5), region = 107 }
 0x219   : > { %s1441_s26 = sld [smem:[#allocation9_spill]] }
 0x21a   : > { %s1442_s27 = sld [smem:[#allocation10_spill]] }
 0x21b   : > { %s1444_s22 = smov %s1437_s8 }
 0x21d   :  { %737 = vsyncpa [#allocation4], 1 }
 0x21e   :  { %739 = vsyncpa [#allocation4 + $0x1], 1 }

// kernel: tpu_custom_call.1
= control target key start
LH: loop header
LB: loop body
LE: loop exit
PB: predicated region body
PF: predicated region fallthrough
CT: control target
= control target key end

     0   :  { %11 = vsyncpa [#allocation4], 0  ;;  %s1412_s0 = inlined_call_operand.vmem [shape: f32[2,1,4,256], index: 0, kind: input, shape index: {}]   ;;  %s1413_s1 = inlined_call_operand.vmem [shape: f32[256,50], index: 1, kind: input, shape index: {}]   ;;  %s1414_s2 = inlined_call_operand.vmem [shape: f32[1,4,4,4], index: 2, kind: input, shape index: {}]   ;;  %s1415_s3 = inlined_call_operand.vmem [shape: f32[4,4,50], index: 3, kind: input, shape index: {}]   ;;  %s1416_s4 = inlined_call_operand.vmem [shape: f32[4,4,50], index: 4, kind: input, shape index: {}]   ;;  %s1417_s5 = inlined_call_operand.vmem [shape: f32[50,256], index: 5, kind: input, shape index: {}]   ;;  %s1418_s6 = inlined_call_operand.hbm [shape: f32[2,5,4,256], index: 6, kind: output, shape index: {}]  }
   0x1   :  { %13 = vsyncpa [#allocation4 + $0x1], 0  ;;  %s1109_s21 = smov 0   ;;  %s1111_s22 = smov 0  }
   0x2   :  { %s1113_s23 = smov 0   ;;  %s1115_s24 = smov 0  }
   0x3   :  { %s1117_s25 = smov 0   ;;  %s1119_s26 = smov 0  }
   0x4   :  { %s1121_s27 = smov 0   ;;  %s1123_s28 = smov 0  }
   0x5 LB: > { %1426 = sst [smem:[#allocation6_spill]] %s1051_s23  ;;  %s839_s29 = sadd.s32 4294967295, %s1071_s28   ;;  %s1071_s28 = sphi %s1123_s28, %s19_s28   ;;  %s1067_s27 = sphi %s1121_s27, %s1442_s27   ;;  %s1063_s26 = sphi %s1119_s26, %s1441_s26   ;;  %s1059_s25 = sphi %s1117_s25, %s1440_s25   ;;  %s1055_s24 = sphi %s1115_s24, %s1439_s24   ;;  %s1051_s23 = sphi %s1113_s23, %s1438_s23   ;;  %s1047_s22 = sphi %s1111_s22, %s1444_s22   ;;  %s1043_s21 = sphi %s1109_s21, %s1443_s21  }
   0x6   : > { %1427 = sst [smem:[#allocation7_spill]] %s1063_s26  ;;  %s840_s30 = sadd.s32 4294967294, %s1071_s28  }
   0x7   : > { %1428 = sst [smem:[#allocation8_spill]] %s1067_s27  ;;  %s28_s7 = sadd.s32 1, %s1063_s26 }
   0x8   : > { %p29_p0 = scmp.ge.s32.totalorder %s28_s7, 5  ;;  %s31_s8 = sadd.s32 1, %s1067_s27 }
   0x9   : > { %p218_p1 = scmp.ne.s32.totalorder %s1051_s23, %s1047_s22  ;;  %p219_p2 = scmp.eq.s32.totalorder %s839_s29, 9 }
   0xa   : > { %s1446_s7 = smov (%p29_p0, %s28_s7), 0  ;;  %s1448_s8 = smov (!%p29_p0, %s31_s8), %s1067_s27 }
   0xb   : > { %1429 = sst [smem:[#allocation9_spill]] %s1446_s7  ;;  %s204_s9 = ssub.s32 %s1063_s26, %s1446_s7 }
   0xc   : > { %p1160_p3 = por %p219_p2, %p218_p1  ;;  %p33_p4 = scmp.ge.s32.totalorder %s1448_s8, 2 }
   0xd   : > { %p224_p5 = scmp.ne.s32.totalorder %s1047_s22, %s1043_s21  ;;  %p225_p6 = scmp.eq.s32.totalorder %s840_s30, 9 }
   0xe   : > { %p847_p7 = scmp.ge.s32.totalorder %s1071_s28, 1  ;;  %s1450_s8 = smov (%p33_p4, %s1448_s8), 0 }
   0xf   : > { %1431 = sst [smem:[#allocation10_spill]] %s1450_s8  ;;  %p1169_p8 = por %p225_p6, %p224_p5 }
  0x10   : > { %p303_p9 = scmp.lt.s32.totalorder %s1071_s28, 11  ;;  %s203_s12 = ssub.s32 %s1067_s27, %s1450_s8 }
  0x11   : > { %s1432_s11 = scalar_select %p1169_p8, 1, 0 }
  0x12   : > { %s208_s13 = sadd.s32 1, %s1051_s23  ;;  %s205_s14 = sor.u32 %s204_s9, %s203_s12 }
  0x13   : > { %1433 = sst [smem:[#allocation11_spill]] %s1432_s11  ;;  %p304_p10 = pnand %p847_p7, %p303_p9 }
  0x14   : > { %p206_p11 = scmp.eq.s32.totalorder %s205_s14, 0  ;;  %s1420_s16 = sand.u32 (!%p304_p10), 1, %s1047_s22  }
  0x15   : > { %307 = sbr.rel (%p304_p10) target bundleno = 526 (0x20e), region = 44  ;;  %p360_p12 = scmp.lt.s32.totalorder (!%p304_p10), %s1055_s24, 0 }
  0x16   : > { %s1178_s15 = scalar_select %p206_p11, %s1051_s23, %s208_s13  }
  0x17   : > { %s848_s17 = sshll.u32 (!%p304_p10), %s1420_s16, 3  ;;  %p362_p13 = scmp.lt.s32.totalorder (!%p304_p10), %s1059_s25, 1 }
  0x18   : > { %1434 = sst [smem:[#allocation12_spill]] %s1178_s15  ;;  %s1186_s18 = sadd.s32 (!%p304_p10), 4294967295, %s1055_s24 }
  0x19   : > { %p383_p0 = scmp.gt.s32.totalorder (!%p304_p10), %s1186_s18, 0  ;;  %p861_p1 = scmp.lt.s32.totalorder (!%p304_p10), %s1186_s18, 3 }
  0x1a   : > { %s361_s19 = scalar_select %p360_p12, %s1055_s24, 0 }
  0x1b   : > { %s363_s20 = scalar_select %p362_p13, %s1059_s25, 1 }
  0x1c   : > { %s1452_s19 = smov (!%p360_p12, %s361_s19), 0  ;;  %p874_p2 = scmp.ne.s32.totalorder %s1055_s24, 0 }
  0x1d   : > { %s853_s29 = sshll.u32 %s363_s20, 1  ;;  %s852_s30 = sshll.u32 %s1452_s19, 1 }
  0x1e   : > { %s899_s9 = sshll.u32 %s1452_s19, 4  ;;  %s368_s12 = sadd.s32 %s853_s29, %s852_s30 }
  0x1f   : > { %s1194_s8 = scalar_lea.vmem %s1414_s2, %s899_s9  ;;  %s854_s16 = sshll.u32 %s368_s12, 2 }
  0x20   : > { %s1200_s26 = scalar_lea.vmem %s1412_s0, %s854_s16  ;;  %s1213_s12 = scalar_lea.vmem [#allocation3], %s848_s17 }
  0x21   : > { %s384_s15 = scalar_select %p383_p0, %s1186_s18, 0 }
  0x22   : > { %405 = sbr.rel (%p874_p2) target bundleno = 44 (0x2c), region = 48 }
  0x23   : > { %s1454_s15 = smov (!%p861_p1, %s384_s15), 3 }
  0x24   : > { %s866_s23 = sshll.u32 %s1454_s15, 2 }
  0x25   : > { %s1206_s19 = scalar_lea.vmem %s1415_s3, %s866_s23  ;;  %s1211_s9 = scalar_lea.vmem %s1416_s4, %s866_s23 }
  0x27   : > { %vm406_vm0 = vcmask 404480   ;;  %v1073_v0 = vmov 0.0  }
  0x28   : > { %407 = vst.msk [vmem:[#allocation2] sm:$0xf] %vm406_vm0, %v1073_v0 }
  0x29   : > { %408 = vst.msk [vmem:[#allocation2 + $0x4] sm:$0xf] %vm406_vm0, %v1073_v0 }
  0x2a   : > { %409 = vst.msk [vmem:[#allocation2 + $0x8] sm:$0xf] %vm406_vm0, %v1073_v0 }
  0x2b   : > { %410 = vst.msk [vmem:[#allocation2 + $0xc] sm:$0xf] %vm406_vm0, %v1073_v0 }
  0x2c PF: > { %p875_p4 = scmp.ge.s32.totalorder %s1055_s24, 1 }
  0x2e   : > { %414 = sbr.rel (%p875_p4) target bundleno = 357 (0x165), region = 52 }
  0x33   : > { %v432_v1 = vld [vmem:[%s1413_s1 + $0x78] sm:$0xff]  ;;  %v431_v3 = vld [vmem:[%s1413_s1 + $0x70] sm:$0xff]  ;;  %v430_v5 = vld [vmem:[%s1413_s1 + $0x68] sm:$0xff]  ;;  %vm501_vm1 = vcmask 1043456   ;;  %vm497_vm2 = vcmask 31744   ;;  %vm526_vm3 = vcmask 404480  }
  0x34   : > { %v448_v2 = vld [vmem:[%s1413_s1 + $0xf8] sm:$0xff]  ;;  %455 = vmatpush.msra.mxu0 %v432_v1  ;;  %v447_v4 = vld [vmem:[%s1413_s1 + $0xf0] sm:$0xff]  ;;  %v446_v6 = vld [vmem:[%s1413_s1 + $0xe8] sm:$0xff] }
  0x35   : > { %475 = vmatpush.msra.mxu1 %v448_v2  ;;  %v429_v7 = vld [vmem:[%s1413_s1 + $0x60] sm:$0xff]  ;;  %v428_v9 = vld [vmem:[%s1413_s1 + $0x58] sm:$0xff]  ;;  %v427_v11 = vld [vmem:[%s1413_s1 + $0x50] sm:$0xff] }
  0x36   : > { %456 = vmatpush.msra.mxu0 %v431_v3  ;;  %v445_v8 = vld [vmem:[%s1413_s1 + $0xe0] sm:$0xff]  ;;  %v444_v10 = vld [vmem:[%s1413_s1 + $0xd8] sm:$0xff]  ;;  %v443_v12 = vld [vmem:[%s1413_s1 + $0xd0] sm:$0xff] }
  0x37   : > { %476 = vmatpush.msra.mxu1 %v447_v4  ;;  %v426_v13 = vld [vmem:[%s1413_s1 + $0x48] sm:$0xff]  ;;  %v415_v15 = vld [vmem:[%s1200_s26] sm:$0xff]  ;;  %v424_v18 = vld [vmem:[%s1413_s1 + $0x38] sm:$0xff] }
  0x38   : > { %457 = vmatpush.msra.mxu0 %v430_v5  ;;  %v442_v14 = vld [vmem:[%s1413_s1 + $0xc8] sm:$0xff]  ;;  %416 = vst [vmem:[%s1213_s12] sm:$0xff] %v415_v15  ;;  %v425_v16 = vld [vmem:[%s1413_s1 + $0x40] sm:$0xff]  ;;  %v440_v19 = vld [vmem:[%s1413_s1 + $0xb8] sm:$0xff] }
  0x39   : > { %477 = vmatpush.msra.mxu1 %v446_v6  ;;  %v441_v17 = vld [vmem:[%s1413_s1 + $0xc0] sm:$0xff]  ;;  %450 = vst [vmem:[#allocation1] ss:$2 sm:$0xff] %v415_v15  ;;  %v423_v20 = vld [vmem:[%s1413_s1 + $0x30] sm:$0xff]  ;;  %v422_v22 = vld [vmem:[%s1413_s1 + $0x28] sm:$0xff] }
  0x3a   : > { %458 = vmatpush.msra.mxu0 %v429_v7  ;;  %v439_v21 = vld [vmem:[%s1413_s1 + $0xb0] sm:$0xff]  ;;  %v438_v23 = vld [vmem:[%s1413_s1 + $0xa8] sm:$0xff]  ;;  %v421_v24 = vld [vmem:[%s1413_s1 + $0x20] sm:$0xff] }
  0x3b   : > { %478 = vmatpush.msra.mxu1 %v445_v8  ;;  %v437_v25 = vld [vmem:[%s1413_s1 + $0xa0] sm:$0xff]  ;;  %v420_v26 = vld [vmem:[%s1413_s1 + $0x18] sm:$0xff]  ;;  %v419_v28 = vld [vmem:[%s1413_s1 + $0x10] sm:$0xff] }
  0x3c   : > { %459 = vmatpush.msra.mxu0 %v428_v9  ;;  %v436_v27 = vld [vmem:[%s1413_s1 + $0x98] sm:$0xff]  ;;  %v435_v29 = vld [vmem:[%s1413_s1 + $0x90] sm:$0xff]  ;;  %v418_v30 = vld [vmem:[%s1413_s1 + $0x8] sm:$0xff] }
  0x3d   : > { %479 = vmatpush.msra.mxu1 %v444_v10  ;;  %v434_v31 = vld [vmem:[%s1413_s1 + $0x88] sm:$0xff]  ;;  %v417_v32 = vld [vmem:[%s1413_s1] sm:$0xff]  ;;  %v558_v49 = vld [vmem:[#allocation2 + $0x8] sm:$0xf] }
  0x3e   : > { %460 = vmatpush.msra.mxu0 %v427_v11  ;;  %v433_v33 = vld [vmem:[%s1413_s1 + $0x80] sm:$0xff]  ;;  %v881_v41 = vld [vmem:[%s1194_s8 + $0x8] sm:$0xf]  ;;  %v884_v42 = vld [vmem:[%s1194_s8 + $0xc] sm:$0xf] }
  0x3f   : > { %480 = vmatpush.msra.mxu1 %v443_v12  ;;  %v496_v39 = vld [vmem:[%s1194_s8] sm:$0xf]  ;;  %v878_v40 = vld [vmem:[%s1194_s8 + $0x4] sm:$0xf]  ;;  %v495_v43 = vld [vmem:[#allocation2] sm:$0xf] }
  0x40   : > { %461 = vmatpush.msra.mxu0 %v426_v13  ;;  %v451_v34 = vld.sshfl [vmem:[#allocation1] sm:$0xff pattern:$0x75316420]  ;;  %v452_v35 = vld.sshfl [vmem:[#allocation1 + $0x8] sm:$0xff pattern:$0x75316420] }
  0x41   : > { %481 = vmatpush.msra.mxu1 %v442_v14  ;;  %v529_v44 = vld [vmem:[#allocation2 + $0x4] sm:$0xf]  ;;  %v587_v50 = vld [vmem:[#allocation2 + $0xc] sm:$0xf] }
  0x42   : > { %462 = vmatpush.msra.mxu0 %v425_v16 }
  0x43   : > { %482 = vmatpush.msra.mxu1 %v441_v17 }
  0x44   : > { %463 = vmatpush.msra.mxu0 %v424_v18 }
  0x45   : > { %483 = vmatpush.msra.mxu1 %v440_v19 }
  0x46   : > { %464 = vmatpush.msra.mxu0 %v423_v20 }
  0x47   : > { %484 = vmatpush.msra.mxu1 %v439_v21 }
  0x48   : > { %465 = vmatpush.msra.mxu0 %v422_v22 }
  0x49   : > { %485 = vmatpush.msra.mxu1 %v438_v23 }
  0x4a   : > { %466 = vmatpush.msra.mxu0 %v421_v24 }
  0x4b   : > { %486 = vmatpush.msra.mxu1 %v437_v25 }
  0x4c   : > { %467 = vmatpush.msra.mxu0 %v420_v26 }
  0x4d   : > { %487 = vmatpush.msra.mxu1 %v436_v27 }
  0x4e   : > { %468 = vmatpush.msra.mxu0 %v419_v28 }
  0x4f   : > { %488 = vmatpush.msra.mxu1 %v435_v29 }
  0x50   : > { %469 = vmatpush.msra.mxu0 %v418_v30 }
  0x51   : > { %489 = vmatpush.msra.mxu1 %v434_v31 }
  0x52   : > { %470 = vmatpush.msra.mxu0 %v417_v32 }
  0x53   : > { %490 = vmatpush.msra.mxu1 %v433_v33  ;;  %471 = vmatmul.f32.vlgmr.msra.gmra.mxu0 %v451_v34 }
  0x54   : > { %491 = vmatmul.f32.vlgmr.msra.gmra.mxu1 %v452_v35 }
  0xd0   : > { %v472_v36 = vpop.f32.mrf.mxu0 }
  0xd1   : > { %v492_v37 = vpop.f32.mrf.mxu1 }
  0xd2   : > { %v493_v38 = vadd.f32 %v492_v37, %v472_v36 }
  0xd4   : > { %876 = vmatpush.msk.msra.mxu2 %vm501_vm1, %v493_v38  ;;  %879 = vmatpush.msk.msra.mxu3 %vm501_vm1, %v493_v38 }
  0xd5   : > { %877 = vmatmul.msk.f32.vlgmr.msra.gmra.mxu2 %vm497_vm2, %v496_v39  ;;  %880 = vmatmul.msk.f32.vlgmr.msra.gmra.mxu3 %vm497_vm2, %v878_v40 }
  0xd6   : > { %882 = vmatpush.msk.msrb.mxu2 %vm501_vm1, %v493_v38  ;;  %885 = vmatpush.msk.msrb.mxu3 %vm501_vm1, %v493_v38 }
  0xdd   : > { %883 = vmatmul.msk.f32.vlgmr.msrb.gmra.mxu2 %vm497_vm2, %v881_v41  ;;  %886 = vmatmul.msk.f32.vlgmr.msrb.gmra.mxu3 %vm497_vm2, %v884_v42 }
 0x158   : > { %v522_v45 = vpop.f32.mrf.mxu2  ;;  %v552_v46 = vpop.f32.mrf.mxu3 }
 0x159   : > { %v525_v47 = vadd.f32 %v522_v45, %v495_v43  ;;  %v555_v48 = vadd.f32 %v552_v46, %v529_v44 }
 0x15b   : > { %527 = vst.msk [vmem:[#allocation2] sm:$0xf] %vm526_vm3, %v525_v47 }
 0x15c   : > { %556 = vst.msk [vmem:[#allocation2 + $0x4] sm:$0xf] %vm526_vm3, %v555_v48 }
 0x160   : > { %v581_v51 = vpop.f32.mrf.mxu2  ;;  %v610_v52 = vpop.f32.mrf.mxu3 }
 0x161   : > { %v584_v53 = vadd.f32 %v581_v51, %v558_v49  ;;  %v613_v54 = vadd.f32 %v610_v52, %v587_v50 }
 0x163   : > { %585 = vst.msk [vmem:[#allocation2 + $0x8] sm:$0xf] %vm526_vm3, %v584_v53 }
 0x164   : > { %614 = vst.msk [vmem:[#allocation2 + $0xc] sm:$0xf] %vm526_vm3, %v613_v54 }
 0x165 PF: > { %p887_p5 = scmp.lt.s32.totalorder %s1055_s24, 1 }
 0x166   : > { %s889_s14 = sshll.u32 (!%p887_p5), %s1186_s18, 2 }
 0x167   : > { %618 = sbr.rel (%p887_p5) target bundleno = 508 (0x1fc), region = 56  ;;  %s621_s18 = scalar_lea.vmem (!%p887_p5), [#allocation2], %s889_s14 }
 0x16c   : > { %v641_v55 = vld [vmem:[%s1417_s5 + $0x68] sm:$0x3]  ;;  %vm646_vm4 = vcmask 1041408   ;;  %v640_v56 = vld [vmem:[%s1417_s5 + $0x60] sm:$0x3]  ;;  %v639_v57 = vld [vmem:[%s1417_s5 + $0x58] sm:$0xff] }
 0x16d   : > { %892 = vmatpush.msk.msra.mxu1 %vm646_vm4, %v641_v55  ;;  %890 = vmatpush.msk.msra.mxu0 %vm646_vm4, %v640_v56  ;;  %v638_v58 = vld [vmem:[%s1417_s5 + $0x50] sm:$0xff]  ;;  %v637_v59 = vld [vmem:[%s1417_s5 + $0x48] sm:$0xff]  ;;  %v636_v60 = vld [vmem:[%s1417_s5 + $0x40] sm:$0xff]  ;;  %vm642_vm5 = vcmask 408576   ;;  %vm696_vm6 = vcmask 1043456  }
 0x16e   : > { %v635_v61 = vld [vmem:[%s1417_s5 + $0x38] sm:$0xff]  ;;  %v634_v62 = vld [vmem:[%s1417_s5 + $0x30] sm:$0xff]  ;;  %v622_v63 = vld [vmem:[%s621_s18] sm:$0xf] }
 0x16f   : > { %683 = vmatpush.msra.mxu1 %v639_v57  ;;  %663 = vmatpush.msra.mxu0 %v638_v58  ;;  %v623_v0 = vld [vmem:[%s1206_s19] sm:$0xf]  ;;  %v633_v2 = vld [vmem:[%s1417_s5 + $0x28] sm:$0xff]  ;;  %v631_v6 = vld [vmem:[%s1417_s5 + $0x18] sm:$0xff] }
 0x170   : > { %v624_v1 = vadd.f32 %v623_v0, %v622_v63  ;;  %v632_v3 = vld [vmem:[%s1417_s5 + $0x20] sm:$0xff]  ;;  %v630_v7 = vld [vmem:[%s1417_s5 + $0x10] sm:$0xff]  ;;  %v629_v8 = vld [vmem:[%s1417_s5 + $0x8] sm:$0xff] }
 0x171   : > { %684 = vmatpush.msra.mxu1 %v637_v59  ;;  %664 = vmatpush.msra.mxu0 %v636_v60  ;;  %v626_v5 = vld [vmem:[%s1211_s9] sm:$0xf] }
 0x172   : > { %v625_v4 = vmax.f32 %v624_v1, 0.0  ;;  %v628_v10 = vld [vmem:[%s1417_s5] sm:$0xff] }
 0x173   : > { %685 = vmatpush.msra.mxu1 %v635_v61  ;;  %665 = vmatpush.msra.mxu0 %v634_v62 }
 0x174   : > { %v627_v9 = vmul.f32 %v626_v5, %v625_v4 }
 0x175   : > { %686 = vmatpush.msra.mxu1 %v633_v2  ;;  %666 = vmatpush.msra.mxu0 %v632_v3 }
 0x177   : > { %687 = vmatpush.msra.mxu1 %v631_v6  ;;  %667 = vmatpush.msra.mxu0 %v630_v7 }
 0x179   : > { %688 = vmatpush.msra.mxu1 %v629_v8  ;;  %668 = vmatpush.msra.mxu0 %v628_v10 }
 0x17a   : > { %893 = vmatmul.msk.f32.vlgmr.msra.gmra.mxu1 %vm642_vm5, %v627_v9  ;;  %891 = vmatmul.msk.f32.vlgmr.msra.gmra.mxu0 %vm642_vm5, %v627_v9 }
 0x1f7   : > { %v690_v11 = vpop.f32.mrf.mxu1  ;;  %v670_v12 = vpop.f32.mrf.mxu0 }
 0x1f8   : > { %v695_v13 = vrot.slane %v690_v11, 4 }
 0x1fa   : > { %v697_v14 = vsel %vm696_vm6, %v670_v12, %v695_v13 }
 0x1fb   : > { %699 = vst [vmem:[%s1213_s12] sm:$0xff] %v697_v14 }
 0x1fc PF: > { %s895_s9 = sshll.u32 %s1055_s24, 1  ;;  %s904_s8 = smul.u32 10, %s1059_s25 }
 0x1fd   : > { %s716_s7 = sshll.u32 %s1213_s12, 4  ;;  %s1435_s13 = sand.u32 1, %s1047_s22   ;;  %s717_s7 = int_to_ptr.vmem [resolvable:$true] %s716_s7 }
 0x1fe   : > { %s712_s23 = sadd.s32 %s904_s8, %s895_s9  ;;  %s701_s20 = scalar_lea.sflag [#allocation4], %s1435_s13 }
 0x1ff   : > { %s896_s18 = sshll.u32 %s712_s23, 2  ;;  %s997_s12 = scalar_lea.hbm %s1418_s6, 80 }
 0x200   : > { %s714_s16 = scalar_lea.hbm %s1418_s6, %s896_s18 }
 0x201   : > { %s718_s17 = sshll.u32 %s714_s16, 4  ;;  %s719_s17 = int_to_ptr.hbm [resolvable:$true] %s718_s17 }
 0x202   : > { %s991_s19 = sshra.s32 %s719_s17, 4  ;;  %s992_s19 = int_to_ptr.hbm [resolvable:$true] %s991_s19 }
 0x203   : > { %s993_s14 = scalar_lea.hbm %s992_s19, 8  ;;  %p998_p10 = scmp.lt.s32.totalorder %s992_s19, %s1418_s6 }
 0x204   : > { %p994_p6 = scmp.ne.s32.totalorder %s992_s19, %s993_s14  ;;  %p999_p11 = scmp.lt.s32.totalorder %s997_s12, %s993_s14 }
 0x206   : > { %p995_p7 = pnand %p994_p6, %p1160_p3  ;;  %p1000_p12 = por %p999_p11, %p998_p10 }
 0x208   : > { %p996_p9 = pneg %p995_p7 }
 0x20a   : > { %p1001_p13 = pnand %p1000_p12, %p996_p9 }
 0x20c   : > { %1004 = shalt.err (!%p1001_p13)
}
 0x20d   : > { %905 = dma.vmem_to_hbm [thread:$0]  (%p1160_p3), %s717_s7, 128, %s719_s17, %s701_s20  }
 0x20e PF: > { %p911_p0 = scmp.ge.s32.totalorder %s1071_s28, 2  ;;  %s730_s27 = sand.u32 1, %s1043_s21  }
 0x20f   : > { %s731_s9 = scalar_lea.sflag [#allocation4], %s730_s27 }
 0x210   : > { %p908_p1 = pnand %p911_p0, %p1169_p8 }
 0x212   : > { %p909_p2 = pneg %p908_p1 }
 0x214   : > { %1038 = dma.done.wait (%p909_p2), %s731_s9, 128  }
 0x215   : > { %1040 = vsyncadd (%p909_p2), %s731_s9, 4294967168  ;;  %s19_s28 = sadd.s32 1, %s1071_s28   ;;  %s1437_s8 = sld [smem:[#allocation6_spill]] }
 0x216   : > { %p16_p4 = scmp.ge.s32.totalorder %s19_s28, 12   ;;  %s1438_s23 = sld [smem:[#allocation12_spill]] }
 0x217   : > { %s1439_s24 = sld [smem:[#allocation7_spill]]  ;;  %s1443_s21 = smov %s1047_s22 }
 0x218   : > { %s1440_s25 = sld [smem:[#allocation8_spill]]  ;;  %18 = sbr.rel (!%p16_p4) target bundleno = 5 (0x5), region = 107 }
 0x219   : > { %s1441_s26 = sld [smem:[#allocation9_spill]] }
 0x21a   : > { %s1442_s27 = sld [smem:[#allocation10_spill]] }
 0x21b   : > { %s1444_s22 = smov %s1437_s8 }
 0x21d   :  { %737 = vsyncpa [#allocation4], 1 }
 0x21e   :  { %739 = vsyncpa [#allocation4 + $0x1], 1 }

</bundles_post_ra>
